<compile_context>
chip_gen: v7x
topology: tpu7x:2x2x1
jax: 0.10.0
libtpu: 0.0.40
codegen_flags: <defaults>
</compile_context>

<pallas_src>
import math
import functools

import jax
import jax.numpy as jnp
from jax.experimental import pallas as pl
from jax.experimental.pallas import tpu as pltpu


def _round_up(x, m):
    return (x + m - 1) // m * m


# ---------------- generic matmul(+bias) kernel (patch projection / class head) ----

def _matmul_bias_kernel(x_ref, w_ref, b_ref, o_ref):
    o_ref[...] = (
        jnp.dot(x_ref[...], w_ref[...], preferred_element_type=jnp.float32)
        + b_ref[...]
    ).astype(o_ref.dtype)


def pallas_matmul_bias(x, w, b, *, tm=512):
    """(M, K) @ (K, N) + (N,) -> (M, N).

    bf16 MXU operands, f32 accumulate.  M is grid-tiled; N is lane-padded to a
    multiple of 128 so stores are unmasked, then un-padded in the wrapper.
    """
    M, K = x.shape
    K2, N = w.shape
    assert K == K2
    Np = _round_up(max(N, 128), 128)
    tm = min(tm, _round_up(M, 8))
    Mp = _round_up(M, tm)

    xp = jnp.zeros((Mp, K), jnp.bfloat16).at[:M, :].set(x.astype(jnp.bfloat16))
    wp = jnp.zeros((K, Np), jnp.bfloat16).at[:, :N].set(w.astype(jnp.bfloat16))
    bp = jnp.zeros((1, Np), jnp.float32).at[0, :N].set(b.astype(jnp.float32))

    out = pl.pallas_call(
        _matmul_bias_kernel,
        out_shape=jax.ShapeDtypeStruct((Mp, Np), jnp.float32),
        grid=(Mp // tm,),
        in_specs=[
            pl.BlockSpec((tm, K), lambda i: (i, 0)),
            pl.BlockSpec((K, Np), lambda i: (0, 0)),
            pl.BlockSpec((1, Np), lambda i: (0, 0)),
        ],
        out_specs=pl.BlockSpec((tm, Np), lambda i: (i, 0)),
        compiler_params=pltpu.CompilerParams(dimension_semantics=("parallel",)),
    )(xp, wp, bp)
    return out[:M, :N]


# ---------------- fused transformer encoder layer kernel --------------------------

def _layernorm(x, gamma, beta, eps=1e-5):
    mean = jnp.mean(x, axis=-1, keepdims=True)
    var = jnp.mean((x - mean) ** 2, axis=-1, keepdims=True)
    return (x - mean) * jax.lax.rsqrt(var + eps) * gamma + beta


def _encoder_layer_kernel(x_ref, xh_ref, wq_ref, wk_ref, wv_ref, wo_ref, bo_ref,
                          g1_ref, be1_ref, w1_ref, b1_ref, w2_ref, b2_ref,
                          g2_ref, be2_ref, o_ref, h1_scr, h1b_scr, ff_scr,
                          *, head_dim):
    """One batch row per outer grid step; inner grid axis tiles the FFN hidden dim.

    kf == 0    : attention + residual + LayerNorm1 -> h1 scratch (f32 + bf16 copies),
                 zero FFN accumulator
    every kf   : ff_acc += relu(h1 @ W1_chunk + b1_chunk) @ W2_chunk
    kf == last : out = LayerNorm2(h1 + ff_acc + b2)
    """
    scale = 1.0 / math.sqrt(head_dim)
    kf = pl.program_id(1)

    @pl.when(kf == 0)
    def _attention():
        x = x_ref[...]                                  # (S, E)  f32
        xh = xh_ref[...]                                # (H, S, hd) bf16 (head-major)

        # Per-head Q/K/V: same (hd, hd) weight applied to every head (batched matmul).
        q = jnp.einsum('hsd,hde->hse', xh, wq_ref[...],
                       preferred_element_type=jnp.float32)
        k = jnp.einsum('hsd,hde->hse', xh, wk_ref[...],
                       preferred_element_type=jnp.float32)
        v = jnp.einsum('hsd,hde->hse', xh, wv_ref[...],
                       preferred_element_type=jnp.float32)

        qb = (q * scale).astype(jnp.bfloat16)           # fold 1/sqrt(hd) into q once
        kb = k.astype(jnp.bfloat16)
        vb = v.astype(jnp.bfloat16)

        s = jnp.einsum('hqd,hkd->hqk', qb, kb,
                       preferred_element_type=jnp.float32)       # (H, S, S) f32
        s = s - jnp.max(s, axis=-1, keepdims=True)
        p = jnp.exp(s)
        p = p * pl.reciprocal(jnp.sum(p, axis=-1, keepdims=True), approx=True)

        ctx = jnp.einsum('hqk,hkd->hqd', p.astype(jnp.bfloat16), vb,
                         preferred_element_type=jnp.float32)     # (H, S, hd)

        # concat(heads) @ Wo.T  ==  sum_h  ctx_h @ Wo.T[h*hd:(h+1)*hd, :]
        heads_out = jnp.einsum('hsd,hde->hse', ctx.astype(jnp.bfloat16), wo_ref[...],
                               preferred_element_type=jnp.float32)  # (H, S, E)
        attn = jnp.sum(heads_out, axis=0) + bo_ref[...]

        # TODO(synk): nn.Dropout is identity in eval mode; no stochastic dropout applied.
        h1 = _layernorm(x + attn, g1_ref[...], be1_ref[...])
        h1_scr[...] = h1                                # f32 copy (residual + LN2)
        h1b_scr[...] = h1.astype(jnp.bfloat16)          # bf16 copy for MXU operands
        ff_scr[...] = jnp.zeros_like(ff_scr)

    # FFN chunk over the hidden dim F (ReLU is elementwise over F, so chunking is exact).
    a1 = jnp.dot(h1b_scr[...], w1_ref[...],
                 preferred_element_type=jnp.float32) + b1_ref[...]
    a1 = jnp.maximum(a1, 0.0)
    ff_scr[...] += jnp.dot(a1.astype(jnp.bfloat16), w2_ref[...],
                           preferred_element_type=jnp.float32)

    @pl.when(kf == pl.num_programs(1) - 1)
    def _finalize():
        out = h1_scr[...] + ff_scr[...] + b2_ref[...]
        o_ref[...] = _layernorm(out, g2_ref[...], be2_ref[...]).astype(o_ref.dtype)


def _pick_f_tile(F, f_tile):
    if F <= f_tile:
        return F
    if F % f_tile == 0:
        return f_tile
    for cand in range(f_tile, 127, -128):
        if F % cand == 0:
            return cand
    return F


def encoder_layer(x, xh, p, num_heads, head_dim, *, f_tile=512):
    B, S, E = x.shape
    F = p["w1"].shape[1]
    TF = _pick_f_tile(F, f_tile)
    KF = F // TF

    kern = functools.partial(_encoder_layer_kernel, head_dim=head_dim)

    def rep2(shape):
        return pl.BlockSpec(shape, lambda b, kf: (0, 0))

    def rep3(shape):
        return pl.BlockSpec(shape, lambda b, kf: (0, 0, 0))

    in_specs = [
        pl.BlockSpec((None, S, E), lambda b, kf: (b, 0, 0)),                       # x
        pl.BlockSpec((None, num_heads, S, head_dim), lambda b, kf: (b, 0, 0, 0)),  # xh
        rep3((num_heads, head_dim, head_dim)),                                     # Wq.T
        rep3((num_heads, head_dim, head_dim)),                                     # Wk.T
        rep3((num_heads, head_dim, head_dim)),                                     # Wv.T
        rep3((num_heads, head_dim, E)),                                            # Wo.T (H,hd,E)
        rep2((1, E)),                                                              # bo
        rep2((1, E)), rep2((1, E)),                                                # ln1 gamma/beta
        pl.BlockSpec((E, TF), lambda b, kf: (0, kf)),                              # W1.T chunk
        pl.BlockSpec((1, TF), lambda b, kf: (0, kf)),                              # b1 chunk
        pl.BlockSpec((TF, E), lambda b, kf: (kf, 0)),                              # W2.T chunk
        rep2((1, E)),                                                              # b2
        rep2((1, E)), rep2((1, E)),                                                # ln2 gamma/beta
    ]
    # NOTE: all index_maps that are constant in kf are not re-DMA'd across the inner
    # grid axis; only x and the F-chunked W1/W2 stream.

    # VMEM budget from the actual block footprint (x2 for double-buffering + scratch).
    blk_bytes = (
        S * E * 4                                   # x (f32)
        + num_heads * S * head_dim * 2              # xh (bf16)
        + 3 * num_heads * head_dim * head_dim * 2   # Wq/Wk/Wv (bf16)
        + num_heads * head_dim * E * 2              # Wo (bf16)
        + E * TF * 2 + TF * E * 2                   # W1/W2 chunks (bf16)
        + (6 * E + TF) * 4                          # biases + LN params (f32)
        + S * E * 4                                 # output block (f32)
    )
    scratch_bytes = S * E * (4 + 2 + 4)             # h1 f32 + h1 bf16 + ff acc f32
    vmem_limit = int(min(64 << 20,
                         max(32 << 20, 2 * blk_bytes + scratch_bytes + (4 << 20))))

    return pl.pallas_call(
        kern,
        out_shape=jax.ShapeDtypeStruct((B, S, E), jnp.float32),
        grid=(B, KF),
        in_specs=in_specs,
        out_specs=pl.BlockSpec((None, S, E), lambda b, kf: (b, 0, 0)),
        scratch_shapes=[pltpu.VMEM((S, E), jnp.float32),   # h1 (post-LN1 residual, f32)
                        pltpu.VMEM((S, E), jnp.bfloat16),  # h1 (bf16 MXU operand)
                        pltpu.VMEM((S, E), jnp.float32)],  # FFN accumulator
        compiler_params=pltpu.CompilerParams(
            dimension_semantics=("parallel", "arbitrary"),
            vmem_limit_bytes=vmem_limit),
    )(x, xh, p["wq_h"], p["wk_h"], p["wv_h"], p["wo_r"], p["bo"],
      p["g1"], p["be1"], p["w1"], p["b1"], p["w2"], p["b2"], p["g2"], p["be2"])


# ---------------- parameter init (deterministic, synthetic) -----------------------

def _position_embedding(seq_len, embed_size):
    # Same formula as the torch code, including the float32 overflow-to-inf behaviour
    # of 10000.0**dim for large dims (phase collapses to 0 there).
    pos = jnp.arange(seq_len, dtype=jnp.float32).reshape(1, seq_len, 1)
    dimf = jnp.arange(embed_size, dtype=jnp.float32).reshape(1, 1, embed_size)
    phase = pos / (10000.0 ** dimf / embed_size)
    return jnp.where((jnp.arange(embed_size).reshape(1, 1, embed_size) % 2) == 0,
                     jnp.sin(phase), jnp.cos(phase))


def init_params(key, img_channels, embed_size, n_grid, img_size, num_classes,
                num_heads, num_features, num_layers):
    hd = embed_size // num_heads
    patch = img_size // n_grid
    seq_len = n_grid * n_grid + 1
    keys = jax.random.split(key, 3 + num_layers)

    conv_w = jax.random.normal(keys[0], (embed_size, img_channels, patch, patch),
                               jnp.float32) * 0.02
    params = {
        "conv_w_flat": conv_w.reshape(embed_size, img_channels * patch * patch)
                             .T.astype(jnp.bfloat16),
        "conv_b": jnp.zeros((embed_size,), jnp.float32),
        "cls": jax.random.normal(keys[1], (1, 1, embed_size), jnp.float32),
        "head_w_t": (jax.random.normal(keys[2], (num_classes, embed_size),
                                       jnp.float32) * 0.02).T.astype(jnp.bfloat16),
        "head_b": jnp.zeros((num_classes,), jnp.float32),
        "pos_emb": _position_embedding(seq_len, embed_size),   # precomputed once
    }

    layers = []
    for l in range(num_layers):
        lk = jax.random.split(keys[3 + l], 7)
        wq = jax.random.normal(lk[0], (hd, hd), jnp.float32) * 0.02
        wk = jax.random.normal(lk[1], (hd, hd), jnp.float32) * 0.02
        wv = jax.random.normal(lk[2], (hd, hd), jnp.float32) * 0.02
        wo = jax.random.normal(lk[3], (embed_size, embed_size), jnp.float32) * 0.02
        bo = jax.random.normal(lk[4], (embed_size,), jnp.float32) * 0.02
        w1 = jax.random.normal(lk[5], (num_features, embed_size), jnp.float32) * 0.02
        w2 = jax.random.normal(lk[6], (embed_size, num_features), jnp.float32) * 0.02
        layers.append(dict(
            # per-head (hd, hd) weights replicated head-major for batched matmuls
            wq_h=jnp.broadcast_to(wq.T, (num_heads, hd, hd)).astype(jnp.bfloat16),
            wk_h=jnp.broadcast_to(wk.T, (num_heads, hd, hd)).astype(jnp.bfloat16),
            wv_h=jnp.broadcast_to(wv.T, (num_heads, hd, hd)).astype(jnp.bfloat16),
            wo_r=wo.T.reshape(num_heads, hd, embed_size).astype(jnp.bfloat16),
            bo=bo.reshape(1, embed_size),
            g1=jnp.ones((1, embed_size), jnp.float32),
            be1=jnp.zeros((1, embed_size), jnp.float32),
            w1=w1.T.astype(jnp.bfloat16),
            b1=jnp.zeros((1, num_features), jnp.float32),
            w2=w2.T.astype(jnp.bfloat16),
            b2=jnp.zeros((1, embed_size), jnp.float32),
            g2=jnp.ones((1, embed_size), jnp.float32),
            be2=jnp.zeros((1, embed_size), jnp.float32),
        ))
    params["layers"] = layers
    return params


# ---------------- full ViT forward -------------------------------------------------

def vit_forward(x, params, *, n_grid, num_heads):
    B, C, H, W = x.shape
    patch = H // n_grid
    E = params["cls"].shape[-1]
    hd = E // num_heads

    # Patch embedding: strided Conv2d == matmul over flattened patches (glue reshape).
    xp = x.reshape(B, C, n_grid, patch, n_grid, patch).transpose(0, 2, 4, 1, 3, 5)
    patches = xp.reshape(B * n_grid * n_grid, C * patch * patch)
    emb = pallas_matmul_bias(patches, params["conv_w_flat"], params["conv_b"])
    emb = emb.reshape(B, n_grid * n_grid, E)

    # cls token + precomputed sinusoidal position embedding.
    cls = jnp.broadcast_to(params["cls"], (B, 1, E))
    x_seq = jnp.concatenate([cls, emb], axis=1) + params["pos_emb"]
    S = x_seq.shape[1]

    for layer in params["layers"]:
        # Head-major bf16 view of x for the per-head Q/K/V projections (glue transpose).
        xh = jnp.transpose(x_seq.reshape(B, S, num_heads, hd),
                           (0, 2, 1, 3)).astype(jnp.bfloat16)
        x_seq = encoder_layer(x_seq, xh, layer, num_heads, hd)

    cls_tok = x_seq[:, 0]                                       # (B, E)
    logits = pallas_matmul_bias(cls_tok, params["head_w_t"], params["head_b"])
    return logits


if __name__ == "__main__":
    # Small shapes consistent with the module:
    B, C, IMG = 2, 3, 16
    EMBED, NGRID, NCLASSES = 32, 4, 10
    NHEADS, NFEATURES, NLAYERS = 4, 64, 2   # seq_len = n_grid^2 + 1 = 17

    key = jax.random.PRNGKey(0)
    kx, kp = jax.random.split(key)
    x = jax.random.normal(kx, (B, C, IMG, IMG), jnp.float32)
    params = init_params(kp, C, EMBED, NGRID, IMG, NCLASSES, NHEADS, NFEATURES,
                         NLAYERS)

    fwd = jax.jit(functools.partial(vit_forward, n_grid=NGRID, num_heads=NHEADS))
    out = fwd(x, params)
    out = jax.block_until_ready(out)
    assert out.shape == (B, NCLASSES), out.shape
    assert bool(jnp.all(jnp.isfinite(out)))
    print("KERNEL_OK")
</pallas_src>

<mosaic_0001>
module attributes {stable_mosaic.version = 11 : i64} {
  func.func @_matmul_bias_kernel(%arg0: i32, %arg1: memref<32x48xbf16, #tpu.memory_space<vmem>>, %arg2: memref<48x128xbf16, #tpu.memory_space<vmem>>, %arg3: memref<1x128xf32, #tpu.memory_space<vmem>>, %arg4: memref<32x128xf32, #tpu.memory_space<vmem>>) attributes {dimension_semantics = [#tpu.dimension_semantics<parallel>], iteration_bounds = array<i64: 1>, scalar_prefetch = 0 : i64, scratch_operands = 0 : i64, tpu.core_type = #tpu.core_type<tc>, window_params = [{transform_indices = @transform_0, window_bounds = array<i64: 32, 48>}, {pipeline_mode = #tpu.pipeline_mode<synchronous>, transform_indices = @transform_1, window_bounds = array<i64: 48, 128>}, {pipeline_mode = #tpu.pipeline_mode<synchronous>, transform_indices = @transform_2, window_bounds = array<i64: 1, 128>}, {transform_indices = @transform_3, window_bounds = array<i64: 32, 128>}]} {
    %c0 = arith.constant 0 : index
    %c0_0 = arith.constant 0 : index
    %0 = vector.load %arg1[%c0, %c0_0] : memref<32x48xbf16, #tpu.memory_space<vmem>>, vector<32x48xbf16>
    %c0_1 = arith.constant 0 : index
    %c0_2 = arith.constant 0 : index
    %1 = vector.load %arg2[%c0_1, %c0_2] : memref<48x128xbf16, #tpu.memory_space<vmem>>, vector<48x128xbf16>
    %cst = arith.constant dense<0.000000e+00> : vector<32x128xf32>
    %2 = tpu.matmul %0, %1, %cst {dimension_numbers = #tpu.dot_dimension_numbers<[1], [0], [0], [1], [0, 0, 1, 1], [], []>} : vector<32x48xbf16>, vector<48x128xbf16>, vector<32x128xf32> -> vector<32x128xf32>
    %c0_3 = arith.constant 0 : index
    %c0_4 = arith.constant 0 : index
    %3 = vector.load %arg3[%c0_3, %c0_4] : memref<1x128xf32, #tpu.memory_space<vmem>>, vector<1x128xf32>
    %4 = vector.broadcast %3 : vector<1x128xf32> to vector<32x128xf32>
    %5 = arith.addf %2, %4 : vector<32x128xf32>
    %c0_5 = arith.constant 0 : index
    %c0_6 = arith.constant 0 : index
    %6 = vector.load %arg4[%c0_5, %c0_6] : memref<32x128xf32, #tpu.memory_space<vmem>>, vector<32x128xf32>
    tpu.vector_store %arg4[%c0_5, %c0_6], %5 {strides = array<i32>} : memref<32x128xf32, #tpu.memory_space<vmem>>, vector<32x128xf32>,
    return
  }
  func.func @transform_0(%arg0: i32) -> (i32, i32) {
    %c0_i32 = arith.constant 0 : i32
    %c0_i32_0 = arith.constant 0 : i32
    return %arg0, %c0_i32 : i32, i32
  }
  func.func @transform_1(%arg0: i32) -> (i32, i32) {
    %c0_i32 = arith.constant 0 : i32
    %c0_i32_0 = arith.constant 0 : i32
    %c0_i32_1 = arith.constant 0 : i32
    return %c0_i32, %c0_i32_0 : i32, i32
  }
  func.func @transform_2(%arg0: i32) -> (i32, i32) {
    %c0_i32 = arith.constant 0 : i32
    %c0_i32_0 = arith.constant 0 : i32
    %c0_i32_1 = arith.constant 0 : i32
    return %c0_i32, %c0_i32_0 : i32, i32
  }
  func.func @transform_3(%arg0: i32) -> (i32, i32) {
    %c0_i32 = arith.constant 0 : i32
    %c0_i32_0 = arith.constant 0 : i32
    return %arg0, %c0_i32 : i32, i32
  }
}

module attributes {stable_mosaic.version = 11 : i64} {
  func.func @_encoder_layer_kernel(%arg0: i32, %arg1: i32, %arg2: memref<1x17x32xf32, #tpu.memory_space<vmem>>, %arg3: memref<1x4x17x8xbf16, #tpu.memory_space<vmem>>, %arg4: memref<4x8x8xbf16, #tpu.memory_space<vmem>>, %arg5: memref<4x8x8xbf16, #tpu.memory_space<vmem>>, %arg6: memref<4x8x8xbf16, #tpu.memory_space<vmem>>, %arg7: memref<4x8x32xbf16, #tpu.memory_space<vmem>>, %arg8: memref<1x32xf32, #tpu.memory_space<vmem>>, %arg9: memref<1x32xf32, #tpu.memory_space<vmem>>, %arg10: memref<1x32xf32, #tpu.memory_space<vmem>>, %arg11: memref<32x64xbf16, #tpu.memory_space<vmem>>, %arg12: memref<1x64xf32, #tpu.memory_space<vmem>>, %arg13: memref<64x32xbf16, #tpu.memory_space<vmem>>, %arg14: memref<1x32xf32, #tpu.memory_space<vmem>>, %arg15: memref<1x32xf32, #tpu.memory_space<vmem>>, %arg16: memref<1x32xf32, #tpu.memory_space<vmem>>, %arg17: memref<1x17x32xf32, #tpu.memory_space<vmem>>, %arg18: memref<17x32xf32, #tpu.memory_space<vmem>>, %arg19: memref<17x32xbf16, #tpu.memory_space<vmem>>, %arg20: memref<17x32xf32, #tpu.memory_space<vmem>>) attributes {dimension_semantics = [#tpu.dimension_semantics<parallel>, #tpu.dimension_semantics<arbitrary>], iteration_bounds = array<i64: 2, 1>, scalar_prefetch = 0 : i64, scratch_operands = 3 : i64, tpu.core_type = #tpu.core_type<tc>, window_params = [{transform_indices = @transform_0, window_bounds = array<i64: 1, 17, 32>}, {transform_indices = @transform_1, window_bounds = array<i64: 1, 4, 17, 8>}, {pipeline_mode = #tpu.pipeline_mode<synchronous>, transform_indices = @transform_2, window_bounds = array<i64: 4, 8, 8>}, {pipeline_mode = #tpu.pipeline_mode<synchronous>, transform_indices = @transform_3, window_bounds = array<i64: 4, 8, 8>}, {pipeline_mode = #tpu.pipeline_mode<synchronous>, transform_indices = @transform_4, window_bounds = array<i64: 4, 8, 8>}, {pipeline_mode = #tpu.pipeline_mode<synchronous>, transform_indices = @transform_5, window_bounds = array<i64: 4, 8, 32>}, {pipeline_mode = #tpu.pipeline_mode<synchronous>, transform_indices = @transform_6, window_bounds = array<i64: 1, 32>}, {pipeline_mode = #tpu.pipeline_mode<synchronous>, transform_indices = @transform_7, window_bounds = array<i64: 1, 32>}, {pipeline_mode = #tpu.pipeline_mode<synchronous>, transform_indices = @transform_8, window_bounds = array<i64: 1, 32>}, {transform_indices = @transform_9, window_bounds = array<i64: 32, 64>}, {transform_indices = @transform_10, window_bounds = array<i64: 1, 64>}, {transform_indices = @transform_11, window_bounds = array<i64: 64, 32>}, {pipeline_mode = #tpu.pipeline_mode<synchronous>, transform_indices = @transform_12, window_bounds = array<i64: 1, 32>}, {pipeline_mode = #tpu.pipeline_mode<synchronous>, transform_indices = @transform_13, window_bounds = array<i64: 1, 32>}, {pipeline_mode = #tpu.pipeline_mode<synchronous>, transform_indices = @transform_14, window_bounds = array<i64: 1, 32>}, {transform_indices = @transform_15, window_bounds = array<i64: 1, 17, 32>}]} {
    %c0_i32 = arith.constant 0 : i32
    %0 = arith.cmpi eq, %arg1, %c0_i32 : i32
    %1 = arith.extui %0 : i1 to i32
    %c0_i32_0 = arith.constant 0 : i32
    %2 = arith.cmpi ne, %1, %c0_i32_0 : i32
    scf.if %2 {
      %c0_16 = arith.constant 0 : index
      %c0_17 = arith.constant 0 : index
      %c0_18 = arith.constant 0 : index
      %20 = vector.load %arg2[%c0_16, %c0_17, %c0_18] : memref<1x17x32xf32, #tpu.memory_space<vmem>>, vector<1x17x32xf32>
      %21 = vector.shape_cast %20 : vector<1x17x32xf32> to vector<17x32xf32>
      %c0_19 = arith.constant 0 : index
      %c0_20 = arith.constant 0 : index
      %c0_21 = arith.constant 0 : index
      %c0_22 = arith.constant 0 : index
      %22 = vector.load %arg3[%c0_19, %c0_20, %c0_21, %c0_22] : memref<1x4x17x8xbf16, #tpu.memory_space<vmem>>, vector<1x4x17x8xbf16>
      %23 = vector.shape_cast %22 : vector<1x4x17x8xbf16> to vector<4x17x8xbf16>
      %c0_23 = arith.constant 0 : index
      %c0_24 = arith.constant 0 : index
      %c0_25 = arith.constant 0 : index
      %24 = vector.load %arg4[%c0_23, %c0_24, %c0_25] : memref<4x8x8xbf16, #tpu.memory_space<vmem>>, vector<4x8x8xbf16>
      "tpu.trace_start"() <{level = 10 : i32, message = "hsd,hde->hse"}> : () -> ()
      %cst_26 = arith.constant dense<0.000000e+00> : vector<4x17x8xf32>
      %25 = tpu.matmul %23, %24, %cst_26 {dimension_numbers = #tpu.dot_dimension_numbers<[2], [1], [1], [2], [0, 0, 0, 1, 1, 2], [0], [0]>} : vector<4x17x8xbf16>, vector<4x8x8xbf16>, vector<4x17x8xf32> -> vector<4x17x8xf32>
      "tpu.trace_stop"() : () -> ()
      %c0_27 = arith.constant 0 : index
      %c0_28 = arith.constant 0 : index
      %c0_29 = arith.constant 0 : index
      %26 = vector.load %arg5[%c0_27, %c0_28, %c0_29] : memref<4x8x8xbf16, #tpu.memory_space<vmem>>, vector<4x8x8xbf16>
      "tpu.trace_start"() <{level = 10 : i32, message = "hsd,hde->hse"}> : () -> ()
      %cst_30 = arith.constant dense<0.000000e+00> : vector<4x17x8xf32>
      %27 = tpu.matmul %23, %26, %cst_30 {dimension_numbers = #tpu.dot_dimension_numbers<[2], [1], [1], [2], [0, 0, 0, 1, 1, 2], [0], [0]>} : vector<4x17x8xbf16>, vector<4x8x8xbf16>, vector<4x17x8xf32> -> vector<4x17x8xf32>
      "tpu.trace_stop"() : () -> ()
      %c0_31 = arith.constant 0 : index
      %c0_32 = arith.constant 0 : index
      %c0_33 = arith.constant 0 : index
      %28 = vector.load %arg6[%c0_31, %c0_32, %c0_33] : memref<4x8x8xbf16, #tpu.memory_space<vmem>>, vector<4x8x8xbf16>
      "tpu.trace_start"() <{level = 10 : i32, message = "hsd,hde->hse"}> : () -> ()
      %cst_34 = arith.constant dense<0.000000e+00> : vector<4x17x8xf32>
      %29 = tpu.matmul %23, %28, %cst_34 {dimension_numbers = #tpu.dot_dimension_numbers<[2], [1], [1], [2], [0, 0, 0, 1, 1, 2], [0], [0]>} : vector<4x17x8xbf16>, vector<4x8x8xbf16>, vector<4x17x8xf32> -> vector<4x17x8xf32>
      "tpu.trace_stop"() : () -> ()
      %cst_35 = arith.constant 0.353553385 : f32
      %30 = vector.broadcast %cst_35 : f32 to vector<4x17x8xf32>
      %31 = arith.mulf %25, %30 : vector<4x17x8xf32>
      %32 = arith.truncf %31 : vector<4x17x8xf32> to vector<4x17x8xbf16>
      %33 = arith.truncf %27 : vector<4x17x8xf32> to vector<4x17x8xbf16>
      %34 = arith.truncf %29 : vector<4x17x8xf32> to vector<4x17x8xbf16>
      "tpu.trace_start"() <{level = 10 : i32, message = "hqd,hkd->hqk"}> : () -> ()
      %cst_36 = arith.constant dense<0.000000e+00> : vector<4x17x17xf32>
      %35 = tpu.matmul %32, %33, %cst_36 {dimension_numbers = #tpu.dot_dimension_numbers<[2], [2], [1], [1], [0, 0, 0, 1, 1, 1], [0], [0]>} : vector<4x17x8xbf16>, vector<4x17x8xbf16>, vector<4x17x17xf32> -> vector<4x17x17xf32>
      "tpu.trace_stop"() : () -> ()
      %cst_37 = arith.constant dense<0xFF800000> : vector<4x17xf32>
      %36 = vector.multi_reduction <maximumf>, %35, %cst_37 [2] : vector<4x17x17xf32> to vector<4x17xf32>
      %37 = vector.shape_cast %36 : vector<4x17xf32> to vector<4x17x1xf32>
      %38 = vector.broadcast %37 : vector<4x17x1xf32> to vector<4x17x17xf32>
      %39 = arith.subf %35, %38 : vector<4x17x17xf32>
      %40 = math.exp %39 : vector<4x17x17xf32>
      %cst_38 = arith.constant dense<0.000000e+00> : vector<4x17xf32>
      %41 = vector.multi_reduction <add>, %40, %cst_38 [2] : vector<4x17x17xf32> to vector<4x17xf32>
      %42 = vector.shape_cast %41 : vector<4x17xf32> to vector<4x17x1xf32>
      %43 = tpu.reciprocal %42 {approx = true} : vector<4x17x1xf32> -> vector<4x17x1xf32>
      %44 = vector.broadcast %43 : vector<4x17x1xf32> to vector<4x17x17xf32>
      %45 = arith.mulf %40, %44 : vector<4x17x17xf32>
      %46 = arith.truncf %45 : vector<4x17x17xf32> to vector<4x17x17xbf16>
      "tpu.trace_start"() <{level = 10 : i32, message = "hqk,hkd->hqd"}> : () -> ()
      %cst_39 = arith.constant dense<0.000000e+00> : vector<4x17x8xf32>
      %47 = tpu.matmul %46, %34, %cst_39 {dimension_numbers = #tpu.dot_dimension_numbers<[2], [1], [1], [2], [0, 0, 0, 1, 1, 2], [0], [0]>} : vector<4x17x17xbf16>, vector<4x17x8xbf16>, vector<4x17x8xf32> -> vector<4x17x8xf32>
      "tpu.trace_stop"() : () -> ()
      %48 = arith.truncf %47 : vector<4x17x8xf32> to vector<4x17x8xbf16>
      %c0_40 = arith.constant 0 : index
      %c0_41 = arith.constant 0 : index
      %c0_42 = arith.constant 0 : index
      %49 = vector.load %arg7[%c0_40, %c0_41, %c0_42] : memref<4x8x32xbf16, #tpu.memory_space<vmem>>, vector<4x8x32xbf16>
      "tpu.trace_start"() <{level = 10 : i32, message = "hsd,hde->hse"}> : () -> ()
      %cst_43 = arith.constant dense<0.000000e+00> : vector<4x17x32xf32>
      %50 = tpu.matmul %48, %49, %cst_43 {dimension_numbers = #tpu.dot_dimension_numbers<[2], [1], [1], [2], [0, 0, 0, 1, 1, 2], [0], [0]>} : vector<4x17x8xbf16>, vector<4x8x32xbf16>, vector<4x17x32xf32> -> vector<4x17x32xf32>
      "tpu.trace_stop"() : () -> ()
      %cst_44 = arith.constant dense<0.000000e+00> : vector<17x32xf32>
      %51 = vector.multi_reduction <add>, %50, %cst_44 [0] : vector<4x17x32xf32> to vector<17x32xf32>
      %c0_45 = arith.constant 0 : index
      %c0_46 = arith.constant 0 : index
      %52 = vector.load %arg8[%c0_45, %c0_46] : memref<1x32xf32, #tpu.memory_space<vmem>>, vector<1x32xf32>
      %53 = vector.broadcast %52 : vector<1x32xf32> to vector<17x32xf32>
      %54 = arith.addf %51, %53 : vector<17x32xf32>
      %55 = arith.addf %21, %54 : vector<17x32xf32>
      %c0_47 = arith.constant 0 : index
      %c0_48 = arith.constant 0 : index
      %56 = vector.load %arg9[%c0_47, %c0_48] : memref<1x32xf32, #tpu.memory_space<vmem>>, vector<1x32xf32>
      %c0_49 = arith.constant 0 : index
      %c0_50 = arith.constant 0 : index
      %57 = vector.load %arg10[%c0_49, %c0_50] : memref<1x32xf32, #tpu.memory_space<vmem>>, vector<1x32xf32>
      %cst_51 = arith.constant dense<0.000000e+00> : vector<17xf32>
      %58 = vector.multi_reduction <add>, %55, %cst_51 [1] : vector<17x32xf32> to vector<17xf32>
      %59 = vector.shape_cast %58 : vector<17xf32> to vector<17x1xf32>
      %cst_52 = arith.constant 3.200000e+01 : f32
      %60 = vector.broadcast %cst_52 : f32 to vector<17x1xf32>
      %61 = arith.divf %59, %60 : vector<17x1xf32>
      %62 = vector.broadcast %61 : vector<17x1xf32> to vector<17x32xf32>
      %63 = arith.subf %55, %62 : vector<17x32xf32>
      %64 = arith.mulf %63, %63 : vector<17x32xf32>
      %cst_53 = arith.constant dense<0.000000e+00> : vector<17xf32>
      %65 = vector.multi_reduction <add>, %64, %cst_53 [1] : vector<17x32xf32> to vector<17xf32>
      %66 = vector.shape_cast %65 : vector<17xf32> to vector<17x1xf32>
      %cst_54 = arith.constant 3.200000e+01 : f32
      %67 = vector.broadcast %cst_54 : f32 to vector<17x1xf32>
      %68 = arith.divf %66, %67 : vector<17x1xf32>
      %69 = vector.broadcast %61 : vector<17x1xf32> to vector<17x32xf32>
      %70 = arith.subf %55, %69 : vector<17x32xf32>
      %cst_55 = arith.constant 9.99999974E-6 : f32
      %71 = vector.broadcast %cst_55 : f32 to vector<17x1xf32>
      %72 = arith.addf %68, %71 : vector<17x1xf32>
      %73 = math.rsqrt %72 : vector<17x1xf32>
      %74 = vector.broadcast %73 : vector<17x1xf32> to vector<17x32xf32>
      %75 = arith.mulf %70, %74 : vector<17x32xf32>
      %76 = vector.broadcast %56 : vector<1x32xf32> to vector<17x32xf32>
      %77 = arith.mulf %75, %76 : vector<17x32xf32>
      %78 = vector.broadcast %57 : vector<1x32xf32> to vector<17x32xf32>
      %79 = arith.addf %77, %78 : vector<17x32xf32>
      %c0_56 = arith.constant 0 : index
      %c0_57 = arith.constant 0 : index
      %80 = vector.load %arg18[%c0_56, %c0_57] : memref<17x32xf32, #tpu.memory_space<vmem>>, vector<17x32xf32>
      tpu.vector_store %arg18[%c0_56, %c0_57], %79 {strides = array<i32>} : memref<17x32xf32, #tpu.memory_space<vmem>>, vector<17x32xf32>,
      %81 = arith.truncf %79 : vector<17x32xf32> to vector<17x32xbf16>
      %c0_58 = arith.constant 0 : index
      %c0_59 = arith.constant 0 : index
      %82 = vector.load %arg19[%c0_58, %c0_59] : memref<17x32xbf16, #tpu.memory_space<vmem>>, vector<17x32xbf16>
      tpu.vector_store %arg19[%c0_58, %c0_59], %81 {strides = array<i32>} : memref<17x32xbf16, #tpu.memory_space<vmem>>, vector<17x32xbf16>,
      %cst_60 = arith.constant 0.000000e+00 : f32
      %83 = vector.broadcast %cst_60 : f32 to vector<17x32xf32>
      %c0_61 = arith.constant 0 : index
      %c0_62 = arith.constant 0 : index
      %84 = vector.load %arg20[%c0_61, %c0_62] : memref<17x32xf32, #tpu.memory_space<vmem>>, vector<17x32xf32>
      tpu.vector_store %arg20[%c0_61, %c0_62], %83 {strides = array<i32>} : memref<17x32xf32, #tpu.memory_space<vmem>>, vector<17x32xf32>,
    } else {
    }
    %c0 = arith.constant 0 : index
    %c0_1 = arith.constant 0 : index
    %3 = vector.load %arg19[%c0, %c0_1] : memref<17x32xbf16, #tpu.memory_space<vmem>>, vector<17x32xbf16>
    %c0_2 = arith.constant 0 : index
    %c0_3 = arith.constant 0 : index
    %4 = vector.load %arg11[%c0_2, %c0_3] : memref<32x64xbf16, #tpu.memory_space<vmem>>, vector<32x64xbf16>
    %cst = arith.constant dense<0.000000e+00> : vector<17x64xf32>
    %5 = tpu.matmul %3, %4, %cst {dimension_numbers = #tpu.dot_dimension_numbers<[1], [0], [0], [1], [0, 0, 1, 1], [], []>} : vector<17x32xbf16>, vector<32x64xbf16>, vector<17x64xf32> -> vector<17x64xf32>
    %c0_4 = arith.constant 0 : index
    %c0_5 = arith.constant 0 : index
    %6 = vector.load %arg12[%c0_4, %c0_5] : memref<1x64xf32, #tpu.memory_space<vmem>>, vector<1x64xf32>
    %7 = vector.broadcast %6 : vector<1x64xf32> to vector<17x64xf32>
    %8 = arith.addf %5, %7 : vector<17x64xf32>
    %cst_6 = arith.constant 0.000000e+00 : f32
    %9 = vector.broadcast %cst_6 : f32 to vector<17x64xf32>
    %10 = arith.maximumf %8, %9 : vector<17x64xf32>
    %c0_7 = arith.constant 0 : index
    %c0_8 = arith.constant 0 : index
    %11 = vector.load %arg20[%c0_7, %c0_8] : memref<17x32xf32, #tpu.memory_space<vmem>>, vector<17x32xf32>
    %12 = arith.truncf %10 : vector<17x64xf32> to vector<17x64xbf16>
    %c0_9 = arith.constant 0 : index
    %c0_10 = arith.constant 0 : index
    %13 = vector.load %arg13[%c0_9, %c0_10] : memref<64x32xbf16, #tpu.memory_space<vmem>>, vector<64x32xbf16>
    %cst_11 = arith.constant dense<0.000000e+00> : vector<17x32xf32>
    %14 = tpu.matmul %12, %13, %cst_11 {dimension_numbers = #tpu.dot_dimension_numbers<[1], [0], [0], [1], [0, 0, 1, 1], [], []>} : vector<17x64xbf16>, vector<64x32xbf16>, vector<17x32xf32> -> vector<17x32xf32>
    %15 = arith.addf %11, %14 : vector<17x32xf32>
    %c0_12 = arith.constant 0 : index
    %c0_13 = arith.constant 0 : index
    %16 = vector.load %arg20[%c0_12, %c0_13] : memref<17x32xf32, #tpu.memory_space<vmem>>, vector<17x32xf32>
    tpu.vector_store %arg20[%c0_12, %c0_13], %15 {strides = array<i32>} : memref<17x32xf32, #tpu.memory_space<vmem>>, vector<17x32xf32>,
    %c0_i32_14 = arith.constant 0 : i32
    %17 = arith.cmpi eq, %arg1, %c0_i32_14 : i32
    %18 = arith.extui %17 : i1 to i32
    %c0_i32_15 = arith.constant 0 : i32
    %19 = arith.cmpi ne, %18, %c0_i32_15 : i32
    scf.if %19 {
      %c0_16 = arith.constant 0 : index
      %c0_17 = arith.constant 0 : index
      %20 = vector.load %arg18[%c0_16, %c0_17] : memref<17x32xf32, #tpu.memory_space<vmem>>, vector<17x32xf32>
      %c0_18 = arith.constant 0 : index
      %c0_19 = arith.constant 0 : index
      %21 = vector.load %arg20[%c0_18, %c0_19] : memref<17x32xf32, #tpu.memory_space<vmem>>, vector<17x32xf32>
      %22 = arith.addf %20, %21 : vector<17x32xf32>
      %c0_20 = arith.constant 0 : index
      %c0_21 = arith.constant 0 : index
      %23 = vector.load %arg14[%c0_20, %c0_21] : memref<1x32xf32, #tpu.memory_space<vmem>>, vector<1x32xf32>
      %24 = vector.broadcast %23 : vector<1x32xf32> to vector<17x32xf32>
      %25 = arith.addf %22, %24 : vector<17x32xf32>
      %c0_22 = arith.constant 0 : index
      %c0_23 = arith.constant 0 : index
      %26 = vector.load %arg15[%c0_22, %c0_23] : memref<1x32xf32, #tpu.memory_space<vmem>>, vector<1x32xf32>
      %c0_24 = arith.constant 0 : index
      %c0_25 = arith.constant 0 : index
      %27 = vector.load %arg16[%c0_24, %c0_25] : memref<1x32xf32, #tpu.memory_space<vmem>>, vector<1x32xf32>
      %cst_26 = arith.constant dense<0.000000e+00> : vector<17xf32>
      %28 = vector.multi_reduction <add>, %25, %cst_26 [1] : vector<17x32xf32> to vector<17xf32>
      %29 = vector.shape_cast %28 : vector<17xf32> to vector<17x1xf32>
      %cst_27 = arith.constant 3.200000e+01 : f32
      %30 = vector.broadcast %cst_27 : f32 to vector<17x1xf32>
      %31 = arith.divf %29, %30 : vector<17x1xf32>
      %32 = vector.broadcast %31 : vector<17x1xf32> to vector<17x32xf32>
      %33 = arith.subf %25, %32 : vector<17x32xf32>
      %34 = arith.mulf %33, %33 : vector<17x32xf32>
      %cst_28 = arith.constant dense<0.000000e+00> : vector<17xf32>
      %35 = vector.multi_reduction <add>, %34, %cst_28 [1] : vector<17x32xf32> to vector<17xf32>
      %36 = vector.shape_cast %35 : vector<17xf32> to vector<17x1xf32>
      %cst_29 = arith.constant 3.200000e+01 : f32
      %37 = vector.broadcast %cst_29 : f32 to vector<17x1xf32>
      %38 = arith.divf %36, %37 : vector<17x1xf32>
      %39 = vector.broadcast %31 : vector<17x1xf32> to vector<17x32xf32>
      %40 = arith.subf %25, %39 : vector<17x32xf32>
      %cst_30 = arith.constant 9.99999974E-6 : f32
      %41 = vector.broadcast %cst_30 : f32 to vector<17x1xf32>
      %42 = arith.addf %38, %41 : vector<17x1xf32>
      %43 = math.rsqrt %42 : vector<17x1xf32>
      %44 = vector.broadcast %43 : vector<17x1xf32> to vector<17x32xf32>
      %45 = arith.mulf %40, %44 : vector<17x32xf32>
      %46 = vector.broadcast %26 : vector<1x32xf32> to vector<17x32xf32>
      %47 = arith.mulf %45, %46 : vector<17x32xf32>
      %48 = vector.broadcast %27 : vector<1x32xf32> to vector<17x32xf32>
      %49 = arith.addf %47, %48 : vector<17x32xf32>
      %c0_31 = arith.constant 0 : index
      %c0_32 = arith.constant 0 : index
      %c0_33 = arith.constant 0 : index
      %50 = vector.load %arg17[%c0_31, %c0_32, %c0_33] : memref<1x17x32xf32, #tpu.memory_space<vmem>>, vector<1x17x32xf32>
      %51 = vector.shape_cast %50 : vector<1x17x32xf32> to vector<17x32xf32>
      %52 = vector.shape_cast %49 : vector<17x32xf32> to vector<1x17x32xf32>
      tpu.vector_store %arg17[%c0_31, %c0_32, %c0_33], %52 {strides = array<i32>} : memref<1x17x32xf32, #tpu.memory_space<vmem>>, vector<1x17x32xf32>,
    } else {
    }
    return
  }
  func.func @transform_0(%arg0: i32, %arg1: i32) -> (i32, i32, i32) {
    %c0_i32 = arith.constant 0 : i32
    %c0_i32_0 = arith.constant 0 : i32
    %c0_i32_1 = arith.constant 0 : i32
    return %arg0, %c0_i32, %c0_i32_0 : i32, i32, i32
  }
  func.func @transform_1(%arg0: i32, %arg1: i32) -> (i32, i32, i32, i32) {
    %c0_i32 = arith.constant 0 : i32
    %c0_i32_0 = arith.constant 0 : i32
    %c0_i32_1 = arith.constant 0 : i32
    %c0_i32_2 = arith.constant 0 : i32
    return %arg0, %c0_i32, %c0_i32_0, %c0_i32_1 : i32, i32, i32, i32
  }
  func.func @transform_2(%arg0: i32, %arg1: i32) -> (i32, i32, i32) {
    %c0_i32 = arith.constant 0 : i32
    %c0_i32_0 = arith.constant 0 : i32
    %c0_i32_1 = arith.constant 0 : i32
    %c0_i32_2 = arith.constant 0 : i32
    return %c0_i32, %c0_i32_0, %c0_i32_1 : i32, i32, i32
  }
  func.func @transform_3(%arg0: i32, %arg1: i32) -> (i32, i32, i32) {
    %c0_i32 = arith.constant 0 : i32
    %c0_i32_0 = arith.constant 0 : i32
    %c0_i32_1 = arith.constant 0 : i32
    %c0_i32_2 = arith.constant 0 : i32
    return %c0_i32, %c0_i32_0, %c0_i32_1 : i32, i32, i32
  }
  func.func @transform_4(%arg0: i32, %arg1: i32) -> (i32, i32, i32) {
    %c0_i32 = arith.constant 0 : i32
    %c0_i32_0 = arith.constant 0 : i32
    %c0_i32_1 = arith.constant 0 : i32
    %c0_i32_2 = arith.constant 0 : i32
    return %c0_i32, %c0_i32_0, %c0_i32_1 : i32, i32, i32
  }
  func.func @transform_5(%arg0: i32, %arg1: i32) -> (i32, i32, i32) {
    %c0_i32 = arith.constant 0 : i32
    %c0_i32_0 = arith.constant 0 : i32
    %c0_i32_1 = arith.constant 0 : i32
    %c0_i32_2 = arith.constant 0 : i32
    return %c0_i32, %c0_i32_0, %c0_i32_1 : i32, i32, i32
  }
  func.func @transform_6(%arg0: i32, %arg1: i32) -> (i32, i32) {
    %c0_i32 = arith.constant 0 : i32
    %c0_i32_0 = arith.constant 0 : i32
    %c0_i32_1 = arith.constant 0 : i32
    return %c0_i32, %c0_i32_0 : i32, i32
  }
  func.func @transform_7(%arg0: i32, %arg1: i32) -> (i32, i32) {
    %c0_i32 = arith.constant 0 : i32
    %c0_i32_0 = arith.constant 0 : i32
    %c0_i32_1 = arith.constant 0 : i32
    return %c0_i32, %c0_i32_0 : i32, i32
  }
  func.func @transform_8(%arg0: i32, %arg1: i32) -> (i32, i32) {
    %c0_i32 = arith.constant 0 : i32
    %c0_i32_0 = arith.constant 0 : i32
    %c0_i32_1 = arith.constant 0 : i32
    return %c0_i32, %c0_i32_0 : i32, i32
  }
  func.func @transform_9(%arg0: i32, %arg1: i32) -> (i32, i32) {
    %c0_i32 = arith.constant 0 : i32
    %c0_i32_0 = arith.constant 0 : i32
    return %c0_i32, %arg1 : i32, i32
  }
  func.func @transform_10(%arg0: i32, %arg1: i32) -> (i32, i32) {
    %c0_i32 = arith.constant 0 : i32
    %c0_i32_0 = arith.constant 0 : i32
    return %c0_i32, %arg1 : i32, i32
  }
  func.func @transform_11(%arg0: i32, %arg1: i32) -> (i32, i32) {
    %c0_i32 = arith.constant 0 : i32
    %c0_i32_0 = arith.constant 0 : i32
    return %arg1, %c0_i32 : i32, i32
  }
  func.func @transform_12(%arg0: i32, %arg1: i32) -> (i32, i32) {
    %c0_i32 = arith.constant 0 : i32
    %c0_i32_0 = arith.constant 0 : i32
    %c0_i32_1 = arith.constant 0 : i32
    return %c0_i32, %c0_i32_0 : i32, i32
  }
  func.func @transform_13(%arg0: i32, %arg1: i32) -> (i32, i32) {
    %c0_i32 = arith.constant 0 : i32
    %c0_i32_0 = arith.constant 0 : i32
    %c0_i32_1 = arith.constant 0 : i32
    return %c0_i32, %c0_i32_0 : i32, i32
  }
  func.func @transform_14(%arg0: i32, %arg1: i32) -> (i32, i32) {
    %c0_i32 = arith.constant 0 : i32
    %c0_i32_0 = arith.constant 0 : i32
    %c0_i32_1 = arith.constant 0 : i32
    return %c0_i32, %c0_i32_0 : i32, i32
  }
  func.func @transform_15(%arg0: i32, %arg1: i32) -> (i32, i32, i32) {
    %c0_i32 = arith.constant 0 : i32
    %c0_i32_0 = arith.constant 0 : i32
    %c0_i32_1 = arith.constant 0 : i32
    return %arg0, %c0_i32, %c0_i32_0 : i32, i32, i32
  }
}

module attributes {stable_mosaic.version = 11 : i64} {
  func.func @_matmul_bias_kernel(%arg0: i32, %arg1: memref<8x32xbf16, #tpu.memory_space<vmem>>, %arg2: memref<32x128xbf16, #tpu.memory_space<vmem>>, %arg3: memref<1x128xf32, #tpu.memory_space<vmem>>, %arg4: memref<8x128xf32, #tpu.memory_space<vmem>>) attributes {dimension_semantics = [#tpu.dimension_semantics<parallel>], iteration_bounds = array<i64: 1>, scalar_prefetch = 0 : i64, scratch_operands = 0 : i64, tpu.core_type = #tpu.core_type<tc>, window_params = [{transform_indices = @transform_0, window_bounds = array<i64: 8, 32>}, {pipeline_mode = #tpu.pipeline_mode<synchronous>, transform_indices = @transform_1, window_bounds = array<i64: 32, 128>}, {pipeline_mode = #tpu.pipeline_mode<synchronous>, transform_indices = @transform_2, window_bounds = array<i64: 1, 128>}, {transform_indices = @transform_3, window_bounds = array<i64: 8, 128>}]} {
    %c0 = arith.constant 0 : index
    %c0_0 = arith.constant 0 : index
    %0 = vector.load %arg1[%c0, %c0_0] : memref<8x32xbf16, #tpu.memory_space<vmem>>, vector<8x32xbf16>
    %c0_1 = arith.constant 0 : index
    %c0_2 = arith.constant 0 : index
    %1 = vector.load %arg2[%c0_1, %c0_2] : memref<32x128xbf16, #tpu.memory_space<vmem>>, vector<32x128xbf16>
    %cst = arith.constant dense<0.000000e+00> : vector<8x128xf32>
    %2 = tpu.matmul %0, %1, %cst {dimension_numbers = #tpu.dot_dimension_numbers<[1], [0], [0], [1], [0, 0, 1, 1], [], []>} : vector<8x32xbf16>, vector<32x128xbf16>, vector<8x128xf32> -> vector<8x128xf32>
    %c0_3 = arith.constant 0 : index
    %c0_4 = arith.constant 0 : index
    %3 = vector.load %arg3[%c0_3, %c0_4] : memref<1x128xf32, #tpu.memory_space<vmem>>, vector<1x128xf32>
    %4 = vector.broadcast %3 : vector<1x128xf32> to vector<8x128xf32>
    %5 = arith.addf %2, %4 : vector<8x128xf32>
    %c0_5 = arith.constant 0 : index
    %c0_6 = arith.constant 0 : index
    %6 = vector.load %arg4[%c0_5, %c0_6] : memref<8x128xf32, #tpu.memory_space<vmem>>, vector<8x128xf32>
    tpu.vector_store %arg4[%c0_5, %c0_6], %5 {strides = array<i32>} : memref<8x128xf32, #tpu.memory_space<vmem>>, vector<8x128xf32>,
    return
  }
  func.func @transform_0(%arg0: i32) -> (i32, i32) {
    %c0_i32 = arith.constant 0 : i32
    %c0_i32_0 = arith.constant 0 : i32
    return %arg0, %c0_i32 : i32, i32
  }
  func.func @transform_1(%arg0: i32) -> (i32, i32) {
    %c0_i32 = arith.constant 0 : i32
    %c0_i32_0 = arith.constant 0 : i32
    %c0_i32_1 = arith.constant 0 : i32
    return %c0_i32, %c0_i32_0 : i32, i32
  }
  func.func @transform_2(%arg0: i32) -> (i32, i32) {
    %c0_i32 = arith.constant 0 : i32
    %c0_i32_0 = arith.constant 0 : i32
    %c0_i32_1 = arith.constant 0 : i32
    return %c0_i32, %c0_i32_0 : i32, i32
  }
  func.func @transform_3(%arg0: i32) -> (i32, i32) {
    %c0_i32 = arith.constant 0 : i32
    %c0_i32_0 = arith.constant 0 : i32
    return %arg0, %c0_i32 : i32, i32
  }
}

</mosaic_0001>

<bundles_post_ra>
// kernel: vit_forward.4
= control target key start
LH: loop header
LB: loop body
LE: loop exit
PB: predicated region body
PF: predicated region fallthrough
CT: control target
= control target key end

     0   :  { %vm60_vm0 = vcmask 392192   ;;  %s202_s1 = inlined_call_operand.vmem [shape: bf16[48,128], index: 1, kind: input, shape index: {}]   ;;  %s203_s0 = inlined_call_operand.vmem [shape: bf16[32,48], index: 0, kind: input, shape index: {}]   ;;  %s204_s2 = inlined_call_operand.vmem [shape: f32[1,128], index: 2, kind: input, shape index: {}]   ;;  %s205_s3 = inlined_call_operand.vmem [shape: f32[32,128], index: 3, kind: output, shape index: {}]  }
   0x1   :  { %v147_v0 = vld [vmem:[%s202_s1] sm:$0xff]   ;;  %v148_v1 = vld [vmem:[%s202_s1 + $0x8] sm:$0xff]   ;;  %v149_v3 = vld [vmem:[%s202_s1 + $0x10] sm:$0xff]  }
   0x2   :  { %137 = vmatprep.subr.bf16.mxu0 %v147_v0  ;;  %v150_v2 = vld [vmem:[%s203_s0] sm:$0xff]   ;;  %v151_v4 = vld [vmem:[%s203_s0 + $0x8] sm:$0xff]  }
   0x3   :  { %138 = vmatpush3.bf16.msra.mxu0 %v147_v0  ;;  %143 = vmatprep.mubr.msk.bf16.mxu0 %vm60_vm0, %v150_v2  ;;  %v124_v5 = vld [vmem:[%s204_s2] ss:$0 sm:$0xff] }
   0x4   :  { %139 = vmatprep.subr.bf16.mxu0 %v148_v1 }
   0x7   :  { %140 = vmatpush3.bf16.msra.mxu0 %v148_v1 }
   0x8   :  { %141 = vmatprep.subr.bf16.mxu0 %v149_v3 }
   0xb   :  { %142 = vmatpush3.bf16.msra.mxu0 %v149_v3 }
   0xe   :  { %144 = vmatmul.mubr.msk.bf16.vlgmr.msra.gmra.mrb[0].mxu0 %vm60_vm0, %v151_v4 }
  0xe1   :  { %v145_v6 = vpop.f32.mrb[0].mxu0 }
  0xe2   :  { %v110_v7 = vadd.f32 %v145_v6, %v124_v5  ;;  %v101_v8 = vpop.f32.mrb[1].mxu0 }
  0xe3   :  { %v102_v9 = vadd.f32 %v124_v5, %v101_v8  ;;  %v146_v10 = vpop.f32.mrb[2].mxu0 }
  0xe4   :  { %118 = vst [vmem:[%s205_s3 + $0x10] sm:$0xff] %v110_v7  ;;  %v113_v11 = vadd.f32 %v146_v10, %v124_v5  ;;  %v104_v12 = vpop.f32.mrb[3].mxu0 }
  0xe5   :  { %116 = vst [vmem:[%s205_s3] sm:$0xff] %v102_v9  ;;  %v105_v13 = vadd.f32 %v124_v5, %v104_v12 }
  0xe6   :  { %119 = vst [vmem:[%s205_s3 + $0x18] sm:$0xff] %v113_v11 }
  0xe7   :  { %117 = vst [vmem:[%s205_s3 + $0x8] sm:$0xff] %v105_v13 }

// kernel: vit_forward.7
= control target key start
LH: loop header
LB: loop body
LE: loop exit
PB: predicated region body
PF: predicated region fallthrough
CT: control target
= control target key end

     0   :  { %v107_v0 = vmov 0.0   ;;  %vm108_vm0 = vmmov 0   ;;  %vm39_vm1 = vcmask 261120   ;;  %s144_s1 = inlined_call_operand.vmem [shape: bf16[32,128], index: 1, kind: input, shape index: {}]   ;;  %s145_s0 = inlined_call_operand.vmem [shape: bf16[8,32], index: 0, kind: input, shape index: {}]   ;;  %s146_s2 = inlined_call_operand.vmem [shape: f32[1,128], index: 2, kind: input, shape index: {}]   ;;  %s147_s3 = inlined_call_operand.vmem [shape: f32[8,128], index: 3, kind: output, shape index: {}]  }
   0x1   :  { %95 = vmatprep.subr.bf16.mxu0 %v107_v0  ;;  %v105_v1 = vld [vmem:[%s144_s1] sm:$0xff]   ;;  %99 = vmatprep.mubr.msk.bf16.mxu0 %vm108_vm0, %v107_v0  ;;  %v106_v2 = vld [vmem:[%s144_s1 + $0x8] sm:$0xff]  }
   0x2   :  { %96 = vmatpush3.bf16.msra.mxu0 %v105_v1  ;;  %v15_v3 = vld [vmem:[%s145_s0] sm:$0xf] }
   0x3   :  { %97 = vmatprep.subr.bf16.mxu0 %v107_v0  ;;  %v88_v4 = vld [vmem:[%s146_s2] ss:$0 sm:$0xff] }
   0x6   :  { %98 = vmatpush3.bf16.msra.mxu0 %v106_v2 }
   0x9   :  { %100 = vmatmul.mubr.msk.bf16.vlgmr.msra.gmra.mrb[0].mxu0 %vm39_vm1, %v15_v3 }
  0xdc   :  { %v77_v5 = vpop.f32.mrb[0].mxu0 }
  0xdd   :  { %v78_v6 = vadd.f32 %v88_v4, %v77_v5  ;;  %v101_v7 = vpop.f32.mrb[1].mxu0 }
  0xde   :  { %v80_v8 = vpop.f32.mrb[2].mxu0 }
  0xdf   :  { %83 = vst [vmem:[%s147_s3] sm:$0xff] %v78_v6  ;;  %v102_v9 = vpop.f32.mrb[3].mxu0 }

// kernel: vit_forward.5
= control target key start
LH: loop header
LB: loop body
LE: loop exit
PB: predicated region body
PF: predicated region fallthrough
CT: control target
= control target key end

     0   :  { %s3287_s18 = smov 0   ;;  %s3289_s19 = smov 0   ;;  %s3670_s0 = inlined_call_operand.vmem [shape: f32[2,17,32], index: 0, kind: input, shape index: {}]   ;;  %s3671_s1 = inlined_call_operand.vmem [shape: bf16[2,4,17,8], index: 1, kind: input, shape index: {}]   ;;  %s3672_s2 = inlined_call_operand.vmem [shape: bf16[4,8,8], index: 2, kind: input, shape index: {}]   ;;  %s3673_s3 = inlined_call_operand.vmem [shape: bf16[4,8,8], index: 3, kind: input, shape index: {}]   ;;  %s3674_s4 = inlined_call_operand.vmem [shape: bf16[4,8,8], index: 4, kind: input, shape index: {}]   ;;  %s3675_s5 = inlined_call_operand.vmem [shape: bf16[4,8,32], index: 5, kind: input, shape index: {}]   ;;  %s3676_s6 = inlined_call_operand.vmem [shape: f32[1,32], index: 6, kind: input, shape index: {}]   ;;  %s3677_s7 = inlined_call_operand.vmem [shape: f32[1,32], index: 7, kind: input, shape index: {}]   ;;  %s3678_s8 = inlined_call_operand.vmem [shape: f32[1,32], index: 8, kind: input, shape index: {}]   ;;  %s3679_s9 = inlined_call_operand.vmem [shape: bf16[32,64], index: 9, kind: input, shape index: {}]   ;;  %s3680_s10 = inlined_call_operand.vmem [shape: f32[1,64], index: 10, kind: input, shape index: {}]   ;;  %s3681_s11 = inlined_call_operand.vmem [shape: bf16[64,32], index: 11, kind: input, shape index: {}]   ;;  %s3682_s12 = inlined_call_operand.vmem [shape: f32[1,32], index: 12, kind: input, shape index: {}]   ;;  %s3683_s13 = inlined_call_operand.vmem [shape: f32[1,32], index: 13, kind: input, shape index: {}]   ;;  %s3684_s14 = inlined_call_operand.vmem [shape: f32[1,32], index: 14, kind: input, shape index: {}]   ;;  %s3685_s15 = inlined_call_operand.vmem [shape: f32[2,17,32], index: 15, kind: output, shape index: {}]  }
   0x1   :  { %s3291_s20 = smov 0  }
   0x2 LB: > { %s37_s21 = sadd.s32 1, %s3199_s19  ;;  %p2696_p0 = scmp.ge.s32.totalorder %s3203_s20, 1  ;;  %s3203_s20 = sphi %s3291_s20, %s25_s20   ;;  %s3199_s19 = sphi %s3289_s19, %s3687_s19   ;;  %s3195_s18 = sphi %s3287_s18, %s3686_s18  }
   0x3   : > { %p39_p1 = scmp.ge.s32.totalorder %s37_s21, 2  ;;  %p487_p2 = scmp.lt.s32.totalorder %s3203_s20, 3 }
   0x5   : > { %s3689_s21 = smov (%p39_p1, %s37_s21), 0  ;;  %p488_p3 = pnand %p2696_p0, %p487_p2 }
   0x6   : > { %v600_v0 = vld [vmem:[%s3672_s2] sm:$0xf] (!%p488_p3)  ;;  %vm619_vm0 = vcmask (!%p488_p3), 1043456   ;;  %v601_v1 = vld [vmem:[%s3672_s2 + $0x4] sm:$0xf] (!%p488_p3)  ;;  %p552_p4 = scmp.lt.s32.totalorder (!%p488_p3), %s3195_s18, 1 }
   0x7   : > { %491 = sbr.rel (%p488_p3) target bundleno = 2356 (0x934), region = 80  ;;  %3053 = vmatprep.subr.msk.bf16.mxu0 (!%p488_p3), %vm619_vm0, %v600_v0  ;;  %3054 = vmatprep.subr.msk.bf16.mxu1 (!%p488_p3), %vm619_vm0, %v601_v1  ;;  %v621_v2 = vsel (!%p488_p3), %vm619_vm0, %v600_v0, 0  ;;  %v686_v3 = vsel (!%p488_p3), %vm619_vm0, %v601_v1, 0  ;;  %v602_v4 = vld [vmem:[%s3672_s2 + $0x8] sm:$0xf] (!%p488_p3)  ;;  %vm612_vm1 = vcmask (!%p488_p3), 64512  }
   0x8   : > { %2874 = vmatpush3.bf16.msra.mxu0 (!%p488_p3), %v621_v2  ;;  %2880 = vmatpush3.bf16.msra.mxu1 (!%p488_p3), %v686_v3  ;;  %v603_v5 = vld [vmem:[%s3672_s2 + $0xc] sm:$0xf] (!%p488_p3)  ;;  %v751_v7 = vsel (!%p488_p3), %vm619_vm0, %v602_v4, 0  ;;  %v866_v12 = vld [vmem:[%s3673_s3] sm:$0xf] (!%p488_p3)  ;;  %vm1706_vm2 = vcmask (!%p488_p3), 1040384  }
   0x9   : > { %3055 = vmatprep.subr.msk.bf16.mxu0 (!%p488_p3), %vm619_vm0, %v602_v4  ;;  %3056 = vmatprep.subr.msk.bf16.mxu1 (!%p488_p3), %vm619_vm0, %v603_v5  ;;  %v816_v9 = vsel (!%p488_p3), %vm619_vm0, %v603_v5, 0  ;;  %v867_v15 = vld [vmem:[%s3673_s3 + $0x4] sm:$0xf] (!%p488_p3)  ;;  %v871_v18 = vsel (!%p488_p3), %vm619_vm0, %v866_v12, 0  ;;  %v868_v20 = vld [vmem:[%s3673_s3 + $0x8] sm:$0xf] (!%p488_p3) }
   0xa   : > { %v922_v19 = vsel (!%p488_p3), %vm619_vm0, %v867_v15, 0  ;;  %v869_v21 = vld [vmem:[%s3673_s3 + $0xc] sm:$0xf] (!%p488_p3)  ;;  %v973_v22 = vsel (!%p488_p3), %vm619_vm0, %v868_v20, 0  ;;  %v1074_v24 = vld [vmem:[%s3674_s4] sm:$0xf] (!%p488_p3) }
   0xb   : > { %v1024_v23 = vsel (!%p488_p3), %vm619_vm0, %v869_v21, 0  ;;  %v1075_v25 = vld [vmem:[%s3674_s4 + $0x4] sm:$0xf] (!%p488_p3)  ;;  %v1079_v26 = vsel (!%p488_p3), %vm619_vm0, %v1074_v24, 0  ;;  %v1076_v28 = vld [vmem:[%s3674_s4 + $0x8] sm:$0xf] (!%p488_p3) }
   0xc   : > { %v1130_v27 = vsel (!%p488_p3), %vm619_vm0, %v1075_v25, 0  ;;  %v1077_v29 = vld [vmem:[%s3674_s4 + $0xc] sm:$0xf] (!%p488_p3)  ;;  %v1181_v30 = vsel (!%p488_p3), %vm619_vm0, %v1076_v28, 0  ;;  %vm1565_vm3 = vcmask (!%p488_p3), 131072   ;;  %vm1558_vm4 = vcmask (!%p488_p3), 138240  }
   0xd   : > { %v1232_v31 = vsel (!%p488_p3), %vm619_vm0, %v1077_v29, 0  ;;  %vm2186_vm5 = vcmask (!%p488_p3), 253952   ;;  %vm2171_vm6 = vcmask (!%p488_p3), 261120   ;;  %vm2283_vm7 = vcmask (!%p488_p3), 257024  }
   0xe   : > { %s3691_s18 = smov (!%p552_p4, %s3195_s18), 1  ;;  %vm2287_vm8 = vsmask.f32 256  ;;  %vm2424_vm10 = vcmask 523264  }
   0xf   : > { %s3078_s30 = smul.u32 48, %s3691_s18  ;;  %vm2288_vm9 = vmand %vm2186_vm5, %vm2287_vm8 }
  0x10   : > { %s3077_s25 = smul.u32 24, %s3691_s18 }
  0x11   : > { %s561_s22 = scalar_lea.vmem %s3671_s1, %s3078_s30 }
  0x12   : > { %v3105_v6 = vld [vmem:[%s561_s22] sm:$0xff]   ;;  %v3106_v8 = vld [vmem:[%s561_s22 + $0xc] sm:$0xff]   ;;  %v3107_v10 = vld [vmem:[%s561_s22 + $0x8] ss:$0 sps:$4 sm:$0x11]   ;;  %s556_s28 = scalar_lea.vmem %s3670_s0, %s3077_s25  ;;  %s579_s27 = scalar_lea.vmem %s3685_s15, %s3077_s25 }
  0x13   : > { %2875 = vmatprep.mubr.msk.bf16.mxu0 %vm612_vm1, %v3105_v6  ;;  %v3109_v11 = vld [vmem:[%s561_s22 + $0x18] sm:$0xff]   ;;  %2881 = vmatprep.mubr.msk.bf16.mxu1 %vm612_vm1, %v3106_v8  ;;  %v3108_v13 = vld [vmem:[%s561_s22 + $0x14] ss:$0 sps:$4 sm:$0x11]   ;;  %v3110_v14 = vld [vmem:[%s561_s22 + $0x24] sm:$0xff]  }
  0x14   : > { %2876 = vmatmul.mubr.msk.bf16.vlgmr.msra.gmra.mrb[0].mxu0 %vm612_vm1, %v3107_v10  ;;  %2882 = vmatmul.mubr.msk.bf16.vlgmr.msra.gmra.mrb[0].mxu1 %vm612_vm1, %v3108_v13  ;;  %v3111_v16 = vld [vmem:[%s561_s22 + $0x20] ss:$0 sps:$4 sm:$0x11]   ;;  %v3112_v17 = vld [vmem:[%s561_s22 + $0x2c] ss:$0 sps:$4 sm:$0x11]  }
  0x15   : > { %2886 = vmatpush3.bf16.msra.mxu0 %v751_v7  ;;  %2892 = vmatpush3.bf16.msra.mxu1 %v816_v9 }
  0x16   : > { %2887 = vmatprep.mubr.msk.bf16.mxu0 %vm612_vm1, %v3109_v11  ;;  %2893 = vmatprep.mubr.msk.bf16.mxu1 %vm612_vm1, %v3110_v14 }
  0x17   : > { %3057 = vmatprep.subr.msk.bf16.mxu0 %vm619_vm0, %v866_v12  ;;  %3058 = vmatprep.subr.msk.bf16.mxu1 %vm619_vm0, %v867_v15 }
  0x1c   : > { %2888 = vmatmul.mubr.msk.bf16.vlgmr.msra.gmra.mrb[4].mxu0 %vm612_vm1, %v3111_v16  ;;  %2894 = vmatmul.mubr.msk.bf16.vlgmr.msra.gmra.mrb[4].mxu1 %vm612_vm1, %v3112_v17 }
  0x1d   : > { %2898 = vmatpush3.bf16.msra.mxu0 %v871_v18  ;;  %2904 = vmatpush3.bf16.msra.mxu1 %v922_v19 }
  0x1e   : > { %2899 = vmatprep.mubr.msk.bf16.mxu0 %vm612_vm1, %v3105_v6  ;;  %2905 = vmatprep.mubr.msk.bf16.mxu1 %vm612_vm1, %v3106_v8 }
  0x1f   : > { %3059 = vmatprep.subr.msk.bf16.mxu0 %vm619_vm0, %v868_v20  ;;  %3060 = vmatprep.subr.msk.bf16.mxu1 %vm619_vm0, %v869_v21 }
  0x24   : > { %2900 = vmatmul.mubr.msk.bf16.vlgmr.msra.gmra.mrb[8].mxu0 %vm612_vm1, %v3107_v10  ;;  %2906 = vmatmul.mubr.msk.bf16.vlgmr.msra.gmra.mrb[8].mxu1 %vm612_vm1, %v3108_v13 }
  0x25   : > { %2910 = vmatpush3.bf16.msra.mxu0 %v973_v22  ;;  %2916 = vmatpush3.bf16.msra.mxu1 %v1024_v23 }
  0x26   : > { %2911 = vmatprep.mubr.msk.bf16.mxu0 %vm612_vm1, %v3109_v11  ;;  %2917 = vmatprep.mubr.msk.bf16.mxu1 %vm612_vm1, %v3110_v14 }
  0x27   : > { %3061 = vmatprep.subr.msk.bf16.mxu0 %vm619_vm0, %v1074_v24  ;;  %3062 = vmatprep.subr.msk.bf16.mxu1 %vm619_vm0, %v1075_v25 }
  0x2c   : > { %2912 = vmatmul.mubr.msk.bf16.vlgmr.msra.gmra.mrb[12].mxu0 %vm612_vm1, %v3111_v16  ;;  %2918 = vmatmul.mubr.msk.bf16.vlgmr.msra.gmra.mrb[12].mxu1 %vm612_vm1, %v3112_v17 }
  0x2d   : > { %2922 = vmatpush3.bf16.msra.mxu0 %v1079_v26  ;;  %2928 = vmatpush3.bf16.msra.mxu1 %v1130_v27 }
  0x2e   : > { %2923 = vmatprep.mubr.msk.bf16.mxu0 %vm612_vm1, %v3105_v6  ;;  %2929 = vmatprep.mubr.msk.bf16.mxu1 %vm612_vm1, %v3106_v8 }
  0x2f   : > { %3063 = vmatprep.subr.msk.bf16.mxu0 %vm619_vm0, %v1076_v28  ;;  %3064 = vmatprep.subr.msk.bf16.mxu1 %vm619_vm0, %v1077_v29 }
  0x34   : > { %2924 = vmatmul.mubr.msk.bf16.vlgmr.msra.gmra.mrb[16].mxu0 %vm612_vm1, %v3107_v10  ;;  %2930 = vmatmul.mubr.msk.bf16.vlgmr.msra.gmra.mrb[16].mxu1 %vm612_vm1, %v3108_v13 }
  0x35   : > { %2935 = vmatprep.mubr.msk.bf16.mxu0 %vm612_vm1, %v3109_v11  ;;  %2941 = vmatprep.mubr.msk.bf16.mxu1 %vm612_vm1, %v3110_v14 }
  0x36   : > { %2934 = vmatpush3.bf16.msra.mxu0 %v1181_v30  ;;  %2940 = vmatpush3.bf16.msra.mxu1 %v1232_v31 }
  0x3c   : > { %2936 = vmatmul.mubr.msk.bf16.vlgmr.msra.gmra.mrb[20].mxu0 %vm612_vm1, %v3111_v16  ;;  %2942 = vmatmul.mubr.msk.bf16.vlgmr.msra.gmra.mrb[20].mxu1 %vm612_vm1, %v3112_v17 }
  0xe7   : > { %v2877_v32 = vpop.f32.mrb[0].mxu0  ;;  %v3395_v33 = vpop.f32.mrb[0].mxu1 }
  0xe8   : > { %v657_v34 = vpop.f32.mrb[1].mxu0  ;;  %v722_v35 = vpop.f32.mrb[1].mxu1  ;;  %v1284_v22 = vmul.f32 0.35355338, %v2877_v32  ;;  %v1287_v24 = vmul.f32 0.35355338, %v3395_v33 }
  0xe9   : > { %v2878_v36 = vpop.f32.mrb[2].mxu0  ;;  %v2884_v37 = vpop.f32.mrb[2].mxu1  ;;  %v1282_v39 = vmul.f32 0.35355338, %v657_v34  ;;  %v1285_v42 = vmul.f32 0.35355338, %v722_v35 }
  0xea   : > { %v660_v38 = vpop.f32.mrb[3].mxu0  ;;  %v725_v41 = vpop.f32.mrb[3].mxu1  ;;  %v1295_v31 = vpack.c.bf16 %v1284_v22, %v1284_v22  ;;  %v1297_v36 = vpack.c.bf16 %v1287_v24, %v1287_v24 }
  0xeb   : > { %v1283_v40 = vmul.f32 0.35355338, %v660_v38  ;;  %v1286_v43 = vmul.f32 0.35355338, %v725_v41 }
  0xed   : > { %v1294_v44 = vpack.c.bf16 %v1283_v40, %v1282_v39  ;;  %v1296_v45 = vpack.c.bf16 %v1286_v43, %v1285_v42 }
  0xef   : > { %v3397_v46 = vpop.f32.mrb[4].mxu0  ;;  %2949 = vmatprep.mubr.msk.bf16.mxu0 %vm612_vm1, %v1294_v44  ;;  %v3400_v47 = vpop.f32.mrb[4].mxu1  ;;  %2957 = vmatprep.mubr.msk.bf16.mxu1 %vm612_vm1, %v1296_v45  ;;  %v3205_v45 = vmov 0  }
  0xf0   : > { %v787_v48 = vpop.f32.mrb[5].mxu0  ;;  %v852_v49 = vpop.f32.mrb[5].mxu1  ;;  %v1290_v42 = vmul.f32 0.35355338, %v3397_v46  ;;  %v1293_v44 = vmul.f32 0.35355338, %v3400_v47 }
  0xf1   : > { %v2890_v50 = vpop.f32.mrb[6].mxu0  ;;  %v2896_v51 = vpop.f32.mrb[6].mxu1  ;;  %v3403_v53 = vmul.f32 0.35355338, %v787_v48  ;;  %v3407_v56 = vmul.f32 0.35355338, %v852_v49 }
  0xf2   : > { %v790_v52 = vpop.f32.mrb[7].mxu0  ;;  %v855_v55 = vpop.f32.mrb[7].mxu1  ;;  %v1708_v48 = vsel %vm1706_vm2, 65535, %v3205_v45  ;;  %v1299_v50 = vpack.c.bf16 %v1290_v42, %v1290_v42 }
  0xf3   : > { %v3405_v54 = vmul.f32 0.35355338, %v790_v52  ;;  %v3409_v57 = vmul.f32 0.35355338, %v855_v55  ;;  %v1301_v52 = vpack.c.bf16 %v1293_v44, %v1293_v44 }
  0xf5   : > { %v1298_v58 = vpack.c.bf16 %v3405_v54, %v3403_v53  ;;  %v1300_v59 = vpack.c.bf16 %v3409_v57, %v3407_v56 }
  0xf7   : > { %v2901_v60 = vpop.f32.mrb[8].mxu0  ;;  %v2907_v61 = vpop.f32.mrb[8].mxu1 }
  0xf8   : > { %v907_v62 = vpop.f32.mrb[9].mxu0  ;;  %v958_v63 = vpop.f32.mrb[9].mxu1  ;;  %v1303_v6 = vpack.c.bf16 %v2901_v60, %v2901_v60  ;;  %v1305_v8 = vpack.c.bf16 %v2907_v61, %v2907_v61 }
  0xf9   : > { %v2902_v0 = vpop.f32.mrb[10].mxu0  ;;  %v2908_v1 = vpop.f32.mrb[10].mxu1 }
  0xfa   : > { %v910_v2 = vpop.f32.mrb[11].mxu0  ;;  %v961_v4 = vpop.f32.mrb[11].mxu1  ;;  %v1328_v20 = vsel %vm612_vm1, %v1303_v6, 0  ;;  %v1388_v21 = vsel %vm612_vm1, %v1305_v8, 0 }
  0xfb   : > { %v1302_v3 = vpack.c.bf16 %v910_v2, %v907_v62  ;;  %v1304_v5 = vpack.c.bf16 %v961_v4, %v958_v63 }
  0xfd   : > { %v1325_v7 = vsel %vm612_vm1, %v1302_v3, 0  ;;  %3065 = vmatprep.subr.msk.bf16.mxu0 %vm612_vm1, %v1302_v3  ;;  %v1385_v9 = vsel %vm612_vm1, %v1304_v5, 0  ;;  %3067 = vmatprep.subr.msk.bf16.mxu1 %vm612_vm1, %v1304_v5 }
  0xfe   : > { %2946 = vmatpush3.bf16.xpose.msra.mxu0 %v1325_v7  ;;  %2954 = vmatpush3.bf16.xpose.msra.mxu1 %v1385_v9 }
  0xff   : > { %3066 = vmatprep.subr.msk.bf16.mxu0 %vm612_vm1, %v1303_v6  ;;  %v2913_v10 = vpop.f32.mrb[12].mxu0  ;;  %3068 = vmatprep.subr.msk.bf16.mxu1 %vm612_vm1, %v1305_v8  ;;  %v2919_v11 = vpop.f32.mrb[12].mxu1 }
 0x100   : > { %v1009_v12 = vpop.f32.mrb[13].mxu0  ;;  %v1060_v13 = vpop.f32.mrb[13].mxu1  ;;  %v1307_v38 = vpack.c.bf16 %v2913_v10, %v2913_v10  ;;  %v1309_v39 = vpack.c.bf16 %v2919_v11, %v2919_v11 }
 0x101   : > { %v2914_v14 = vpop.f32.mrb[14].mxu0  ;;  %v2920_v15 = vpop.f32.mrb[14].mxu1 }
 0x102   : > { %v1012_v16 = vpop.f32.mrb[15].mxu0  ;;  %v1063_v18 = vpop.f32.mrb[15].mxu1  ;;  %v1448_v40 = vsel %vm612_vm1, %v1307_v38, 0  ;;  %v1508_v41 = vsel %vm612_vm1, %v1309_v39, 0 }
 0x103   : > { %v1306_v17 = vpack.c.bf16 %v1012_v16, %v1009_v12  ;;  %v1308_v19 = vpack.c.bf16 %v1063_v18, %v1060_v13 }
 0x105   : > { %v1445_v32 = vsel %vm612_vm1, %v1306_v17, 0  ;;  %v1505_v33 = vsel %vm612_vm1, %v1308_v19, 0 }
 0x106   : > { %2948 = vmatpush3.bf16.xpose.msra.mxu0 %v1328_v20  ;;  %2956 = vmatpush3.bf16.xpose.msra.mxu1 %v1388_v21 }
 0x107   : > { %3069 = vmatprep.subr.msk.bf16.mxu0 %vm612_vm1, %v1306_v17  ;;  %v2925_v23 = vpop.f32.mrb[16].mxu0  ;;  %3071 = vmatprep.subr.msk.bf16.mxu1 %vm612_vm1, %v1308_v19  ;;  %v2931_v25 = vpop.f32.mrb[16].mxu1 }
 0x108   : > { %v1115_v26 = vpop.f32.mrb[17].mxu0  ;;  %v1166_v27 = vpop.f32.mrb[17].mxu1  ;;  %v1311_v43 = vpack.c.bf16 %v2925_v23, %v2925_v23  ;;  %v1313_v49 = vpack.c.bf16 %v2931_v25, %v2931_v25 }
 0x109   : > { %v2926_v28 = vpop.f32.mrb[18].mxu0  ;;  %v2932_v29 = vpop.f32.mrb[18].mxu1 }
 0x10a   : > { %v1118_v30 = vpop.f32.mrb[19].mxu0  ;;  %v1169_v35 = vpop.f32.mrb[19].mxu1  ;;  %v1710_v51 = vand.u32 %v1708_v48, %v1311_v43  ;;  %v1767_v53 = vand.u32 %v1708_v48, %v1313_v49 }
 0x10b   : > { %v1310_v34 = vpack.c.bf16 %v1118_v30, %v1115_v26  ;;  %v1312_v37 = vpack.c.bf16 %v1169_v35, %v1166_v27 }
 0x10d   : > { %2950 = vmatmul.mubr.msk.bf16.vlgmr.msra.gmra.mrb[24].mxu0 %vm612_vm1, %v1295_v31  ;;  %2958 = vmatmul.mubr.msk.bf16.vlgmr.msra.gmra.mrb[24].mxu1 %vm612_vm1, %v1297_v36 }
 0x10e   : > { %2962 = vmatpush3.bf16.xpose.msra.mxu0 %v1445_v32  ;;  %2965 = vmatprep.mubr.msk.bf16.mxu0 %vm612_vm1, %v1298_v58 }
 0x10f   : > { %2970 = vmatpush3.bf16.xpose.msra.mxu1 %v1505_v33  ;;  %2973 = vmatprep.mubr.msk.bf16.mxu1 %vm612_vm1, %v1300_v59  ;;  %v2937_v46 = vpop.f32.mrb[20].mxu0  ;;  %v2943_v47 = vpop.f32.mrb[20].mxu1 }
 0x110   : > { %3070 = vmatprep.subr.msk.bf16.mxu0 %vm612_vm1, %v1307_v38  ;;  %3072 = vmatprep.subr.msk.bf16.mxu1 %vm612_vm1, %v1309_v39  ;;  %v1315_v54 = vpack.c.bf16 %v2937_v46, %v2937_v46  ;;  %v1317_v55 = vpack.c.bf16 %v2943_v47, %v2943_v47  ;;  %v1217_v56 = vpop.f32.mrb[21].mxu0  ;;  %v1268_v57 = vpop.f32.mrb[21].mxu1 }
 0x111   : > { %v2938_v58 = vpop.f32.mrb[22].mxu0  ;;  %v2944_v59 = vpop.f32.mrb[22].mxu1 }
 0x112   : > { %v3440_v60 = vand.u32 %v1708_v48, %v1315_v54  ;;  %v3442_v61 = vand.u32 %v1708_v48, %v1317_v55  ;;  %v1220_v62 = vpop.f32.mrb[23].mxu0  ;;  %v1271_v63 = vpop.f32.mrb[23].mxu1 }
 0x113   : > { %v3444_v0 = vpack.c.bf16 %v1220_v62, %v1217_v56  ;;  %v3446_v1 = vpack.c.bf16 %v1271_v63, %v1268_v57 }
 0x116   : > { %2964 = vmatpush3.bf16.xpose.msra.mxu0 %v1448_v40 }
 0x117   : > { %2972 = vmatpush3.bf16.xpose.msra.mxu1 %v1508_v41  ;;  %2977 = vmatprep.subr.bf16.mxu0 %v1310_v34 }
 0x118   : > { %2985 = vmatprep.subr.bf16.mxu1 %v1312_v37 }
 0x11d   : > { %2966 = vmatmul.mubr.msk.bf16.vlgmr.msra.gmra.mrb[28].mxu0 %vm612_vm1, %v1299_v50 }
 0x11e   : > { %2974 = vmatmul.mubr.msk.bf16.vlgmr.msra.gmra.mrb[28].mxu1 %vm612_vm1, %v1301_v52  ;;  %2978 = vmatpush3.bf16.msra.mxu0 %v1310_v34 }
 0x11f   : > { %2986 = vmatpush3.bf16.msra.mxu1 %v1312_v37  ;;  %2979 = vmatprep.subr.bf16.mxu0 %v1710_v51 }
 0x120   : > { %2987 = vmatprep.subr.bf16.mxu1 %v1767_v53 }
 0x122   : > { %2980 = vmatpush3.bf16.msra.mxu0 %v1710_v51 }
 0x123   : > { %2988 = vmatpush3.bf16.msra.mxu1 %v1767_v53  ;;  %2993 = vmatprep.subr.bf16.mxu0 %v3444_v0 }
 0x124   : > { %3001 = vmatprep.subr.bf16.mxu1 %v3446_v1 }
 0x1e0   : > { %v2951_v2 = vpop.f32.mrb[24].mxu0  ;;  %v2959_v3 = vpop.f32.mrb[24].mxu1 }
 0x1e1   : > { %v1364_v4 = vpop.f32.mrb[25].mxu0  ;;  %v1566_v5 = vsel %vm1565_vm3, %v2951_v2, -inf  ;;  %v1424_v6 = vpop.f32.mrb[25].mxu1  ;;  %v1575_v12 = vsel %vm1565_vm3, %v2959_v3, -inf }
 0x1e2   : > { %1567 = vmax.xlane.f32.xlu1 %v1566_v5  ;;  %v2952_v7 = vpop.f32.mrb[26].mxu0  ;;  %v1559_v8 = vsel %vm1558_vm4, %v1364_v4, -inf  ;;  %v2960_v9 = vpop.f32.mrb[26].mxu1  ;;  %v1569_v14 = vsel %vm1558_vm4, %v1424_v6, -inf }
 0x1e3   : > { %1560 = vmax.xlane.f32.xlu0 %v1559_v8  ;;  %v1367_v10 = vpop.f32.mrb[27].mxu0  ;;  %v1427_v11 = vpop.f32.mrb[27].mxu1 }
 0x1e4   : > { %v1562_v13 = vsel %vm1558_vm4, %v1367_v10, -inf  ;;  %v1572_v15 = vsel %vm1558_vm4, %v1427_v11, -inf }
 0x1e6   : > { %1576 = vmax.xlane.f32.xlu1 %v1575_v12 }
 0x1e7   : > { %1563 = vmax.xlane.f32.xlu0 %v1562_v13 }
 0x1ea   : > { %1570 = vmax.xlane.f32.xlu1 %v1569_v14 }
 0x1eb   : > { %1573 = vmax.xlane.f32.xlu0 %v1572_v15 }
 0x1f0   : > { %v2967_v16 = vpop.f32.mrb[28].mxu0 }
 0x1f1   : > { %v3456_v17 = vpop.f32.mrb[28].mxu1  ;;  %v3458_v18 = vpop.f32.mrb[29].mxu0  ;;  %v1584_v19 = vsel %vm1565_vm3, %v2967_v16, -inf }
 0x1f2   : > { %v1544_v20 = vpop.f32.mrb[29].mxu1  ;;  %1585 = vmax.xlane.f32.xlu0 %v1584_v19  ;;  %v2968_v21 = vpop.f32.mrb[30].mxu0  ;;  %v1578_v26 = vsel %vm1558_vm4, %v3458_v18, -inf  ;;  %v1593_v29 = vsel %vm1565_vm3, %v3456_v17, -inf }
 0x1f3   : > { %v2976_v22 = vpop.f32.mrb[30].mxu1  ;;  %v1587_v23 = vsel %vm1558_vm4, %v1544_v20, -inf  ;;  %v3462_v24 = vpop.f32.mrb[31].mxu0 }
 0x1f4   : > { %v3464_v25 = vpop.f32.mrb[31].mxu1  ;;  %1588 = vmax.xlane.f32.xlu1 %v1587_v23  ;;  %v1581_v27 = vsel %vm1558_vm4, %v3462_v24, -inf }
 0x1f5   : > { %v1590_v28 = vsel %vm1558_vm4, %v3464_v25, -inf }
 0x1f6   : > { %1579 = vmax.xlane.f32.xlu0 %v1578_v26 }
 0x1f8   : > { %1582 = vmax.xlane.f32.xlu1 %v1581_v27 }
 0x1fa   : > { %1591 = vmax.xlane.f32.xlu0 %v1590_v28 }
 0x1fc   : > { %1594 = vmax.xlane.f32.xlu1 %v1593_v29 }
 0x26f   : > { %v1568_v30 = vpop.xlane.xlu1 %1567 }
 0x270   : > { %v1598_v31 = vsub.f32 %v2951_v2, %v1568_v30  ;;  %v1561_v34 = vpop.xlane.xlu0 %1560 }
 0x271   : > { %v1596_v35 = vsub.f32 %v1364_v4, %v1561_v34 }
 0x272   : > { %v1612_v36 = vmul.f32 1.442695, %v1598_v31 }
 0x273   : > { %v1608_v37 = vmul.f32 1.442695, %v1596_v35  ;;  %v1577_v32 = vpop.xlane.xlu1 %1576 }
 0x274   : > { %3121 = vpow2.f32 %v1612_v36  ;;  %v1601_v38 = vsub.f32 %v2959_v3, %v1577_v32  ;;  %v1564_v33 = vpop.xlane.xlu0 %1563 }
 0x275   : > { %3123 = vpow2.f32 %v1608_v37  ;;  %v1597_v40 = vsub.f32 %v1367_v10, %v1564_v33 }
 0x276   : > { %v1618_v39 = vmul.f32 1.442695, %v1601_v38 }
 0x277   : > { %v1571_v41 = vpop.xlane.xlu1 %1570  ;;  %v1610_v45 = vmul.f32 1.442695, %v1597_v40 }
 0x278   : > { %3125 = vpow2.f32 %v1618_v39  ;;  %v1599_v42 = vsub.f32 %v1424_v6, %v1571_v41  ;;  %v1574_v43 = vpop.xlane.xlu0 %1573 }
 0x279   : > { %v1600_v44 = vsub.f32 %v1427_v11, %v1574_v43 }
 0x27a   : > { %v1614_v48 = vmul.f32 1.442695, %v1599_v42 }
 0x27b   : > { %v1616_v49 = vmul.f32 1.442695, %v1600_v44 }
 0x27c   : > { %3127 = vpow2.f32 %v1614_v48 }
 0x27d   : > { %3129 = vpow2.f32 %v1616_v49 }
 0x27e   : > { %v3474_v50 = vpop.eup %3121  ;;  %3131 = vpow2.f32 %v1610_v45 }
 0x27f   : > { %v1586_v51 = vpop.xlane.xlu0 %1585  ;;  %v1638_v52 = vsel %vm1565_vm3, %v3474_v50, 0.0  ;;  %v3478_v53 = vpop.eup %3123 }
 0x280   : > { %v1604_v46 = vsub.f32 %v2967_v16, %v1586_v51  ;;  %1639 = vadd.xlane.f32.xlu0 %v1638_v52  ;;  %v1632_v58 = vsel %vm1558_vm4, %v3478_v53, 0.0 }
 0x281   : > { %v1589_v47 = vpop.xlane.xlu1 %1588 }
 0x282   : > { %v3480_v54 = vpop.eup %3125  ;;  %v1624_v55 = vmul.f32 1.442695, %v1604_v46  ;;  %v1605_v56 = vsub.f32 %v1544_v20, %v1589_v47 }
 0x283   : > { %v1580_v57 = vpop.xlane.xlu0 %1579  ;;  %v1647_v59 = vsel %vm1565_vm3, %v3480_v54, 0.0 }
 0x284   : > { %3133 = vpow2.f32 %v1624_v55  ;;  %v1626_v62 = vmul.f32 1.442695, %v1605_v56  ;;  %v1602_v63 = vsub.f32 %v3458_v18, %v1580_v57  ;;  %1633 = vadd.xlane.f32.xlu0 %v1632_v58  ;;  %1648 = vadd.xlane.f32.xlu1 %v1647_v59 }
 0x285   : > { %v1583_v2 = vpop.xlane.xlu1 %1582 }
 0x286   : > { %v3128_v3 = vpop.eup %3127  ;;  %3135 = vpow2.f32 %v1626_v62  ;;  %v1620_v4 = vmul.f32 1.442695, %v1602_v63  ;;  %v1603_v5 = vsub.f32 %v3462_v24, %v1583_v2 }
 0x287   : > { %v3130_v6 = vpop.eup %3129  ;;  %v1592_v7 = vpop.xlane.xlu0 %1591  ;;  %v1641_v8 = vsel %vm1558_vm4, %v3128_v3, 0.0 }
 0x288   : > { %v3489_v9 = vpop.eup %3131  ;;  %3137 = vpow2.f32 %v1620_v4  ;;  %v1622_v10 = vmul.f32 1.442695, %v1603_v5  ;;  %v1606_v11 = vsub.f32 %v3464_v25, %v1592_v7  ;;  %1642 = vadd.xlane.f32.xlu1 %v1641_v8  ;;  %v1644_v12 = vsel %vm1558_vm4, %v3130_v6, 0.0 }
 0x289   : > { %v1595_v13 = vpop.xlane.xlu1 %1594  ;;  %1645 = vadd.xlane.f32.xlu0 %v1644_v12  ;;  %v1635_v16 = vsel %vm1558_vm4, %v3489_v9, 0.0 }
 0x28a   : > { %3139 = vpow2.f32 %v1622_v10  ;;  %v1628_v14 = vmul.f32 1.442695, %v1606_v11  ;;  %v1607_v15 = vsub.f32 %v3456_v17, %v1595_v13  ;;  %v1939_v10 = vld [vmem:[%s3675_s5] sm:$0xf]  ;;  %v1940_v11 = vld [vmem:[%s3675_s5 + $0x4] sm:$0xf] }
 0x28b   : > { %v1950_v12 = vsel %vm619_vm0, %v1939_v10, 0  ;;  %v2007_v13 = vsel %vm619_vm0, %v1940_v11, 0 }
 0x28c   : > { %3141 = vpow2.f32 %v1628_v14  ;;  %v1630_v18 = vmul.f32 1.442695, %v1607_v15  ;;  %1636 = vadd.xlane.f32.xlu1 %v1635_v16  ;;  %v1941_v14 = vld [vmem:[%s3675_s5 + $0x8] sm:$0xf]  ;;  %v1942_v15 = vld [vmem:[%s3675_s5 + $0xc] sm:$0xf] }
 0x28e   : > { %v3496_v19 = vpop.eup %3133  ;;  %3143 = vpow2.f32 %v1630_v18 }
 0x28f   : > { %v1656_v20 = vsel %vm1565_vm3, %v3496_v19, 0.0 }
 0x290   : > { %v3500_v21 = vpop.eup %3135  ;;  %1657 = vadd.xlane.f32.xlu0 %v1656_v20 }
 0x291   : > { %v1659_v22 = vsel %vm1558_vm4, %v3500_v21, 0.0 }
 0x292   : > { %v3504_v23 = vpop.eup %3137  ;;  %1660 = vadd.xlane.f32.xlu1 %v1659_v22 }
 0x293   : > { %v1650_v17 = vsel %vm1558_vm4, %v3504_v23, 0.0 }
 0x294   : > { %v3508_v24 = vpop.eup %3139  ;;  %1651 = vadd.xlane.f32.xlu0 %v1650_v17 }
 0x295   : > { %v1653_v25 = vsel %vm1558_vm4, %v3508_v24, 0.0 }
 0x296   : > { %v3512_v26 = vpop.eup %3141  ;;  %1654 = vadd.xlane.f32.xlu1 %v1653_v25  ;;  %v2121_v25 = vsel %vm619_vm0, %v1942_v15, 0 }
 0x297   : > { %v1662_v27 = vsel %vm1558_vm4, %v3512_v26, 0.0 }
 0x298   : > { %v3516_v28 = vpop.eup %3143  ;;  %1663 = vadd.xlane.f32.xlu0 %v1662_v27 }
 0x299   : > { %v1665_v29 = vsel %vm1565_vm3, %v3516_v28, 0.0 }
 0x29a   : > { %1666 = vadd.xlane.f32.xlu1 %v1665_v29  ;;  %v2064_v29 = vsel %vm619_vm0, %v1941_v14, 0 }
 0x30d   : > { %v1640_v30 = vpop.xlane.xlu0 %1639 }
 0x311   : > { %v1634_v31 = vpop.xlane.xlu0 %1633  ;;  %v1649_v34 = vpop.xlane.xlu1 %1648 }
 0x312   : > { %3145 = vrcp.f32 %v1649_v34 }
 0x313   : > { %3147 = vrcp.f32 %v1640_v30 }
 0x315   : > { %v1643_v35 = vpop.xlane.xlu1 %1642 }
 0x316   : > { %3149 = vrcp.f32 %v1643_v35  ;;  %v1646_v36 = vpop.xlane.xlu0 %1645 }
 0x317   : > { %3151 = vrcp.f32 %v1646_v36 }
 0x318   : > { %3153 = vrcp.f32 %v1634_v31 }
 0x319   : > { %v1637_v37 = vpop.xlane.xlu1 %1636 }
 0x31a   : > { %3155 = vrcp.f32 %v1637_v37 }
 0x31c   : > { %v3146_v38 = vpop.eup %3145 }
 0x31d   : > { %v1658_v32 = vpop.xlane.xlu0 %1657  ;;  %v3148_v33 = vpop.eup %3147  ;;  %v1685_v42 = vmul.f32 %v3146_v38, %v3480_v54 }
 0x31e   : > { %3157 = vrcp.f32 %v1658_v32  ;;  %v1682_v52 = vmul.f32 %v3148_v33, %v3474_v50 }
 0x31f   : > { %v1661_v39 = vpop.xlane.xlu1 %1660  ;;  %v1695_v55 = vpack.c.bf16 %v1685_v42, %v1685_v42 }
 0x320   : > { %v3150_v40 = vpop.eup %3149  ;;  %v1693_v59 = vpack.c.bf16 %v1682_v52, %v1682_v52 }
 0x321   : > { %v3152_v41 = vpop.eup %3151  ;;  %v1652_v43 = vpop.xlane.xlu0 %1651  ;;  %v1683_v44 = vmul.f32 %v3150_v40, %v3128_v3 }
 0x322   : > { %v3154_v45 = vpop.eup %3153  ;;  %3159 = vrcp.f32 %v1652_v43  ;;  %v1684_v48 = vmul.f32 %v3152_v41, %v3130_v6 }
 0x323   : > { %3161 = vrcp.f32 %v1661_v39  ;;  %v1655_v49 = vpop.xlane.xlu1 %1654  ;;  %v1680_v56 = vmul.f32 %v3154_v45, %v3478_v53 }
 0x324   : > { %v3156_v51 = vpop.eup %3155  ;;  %3163 = vrcp.f32 %v1655_v49  ;;  %v1694_v46 = vpack.c.bf16 %v1684_v48, %v1683_v44 }
 0x325   : > { %v1664_v47 = vpop.xlane.xlu0 %1663  ;;  %v1681_v57 = vmul.f32 %v3156_v51, %v3489_v9 }
 0x326   : > { %3165 = vrcp.f32 %v1664_v47  ;;  %2989 = vmatprep.mubr.msk.bf16.mxu1 %vm1558_vm4, %v1694_v46 }
 0x327   : > { %v1667_v54 = vpop.xlane.xlu1 %1666  ;;  %2990 = vmatmul.mubr.msk.bf16.vlgmr.msra.gmra.mrb[32].mxu1 %vm1558_vm4, %v1695_v55  ;;  %v1692_v58 = vpack.c.bf16 %v1681_v57, %v1680_v56 }
 0x328   : > { %3167 = vrcp.f32 %v1667_v54  ;;  %3002 = vmatpush3.bf16.msra.mxu1 %v3446_v1  ;;  %v3158_v50 = vpop.eup %3157 }
 0x329   : > { %3003 = vmatprep.subr.bf16.mxu1 %v3442_v61  ;;  %2981 = vmatprep.mubr.msk.bf16.mxu0 %vm1558_vm4, %v1692_v58  ;;  %v1688_v1 = vmul.f32 %v3158_v50, %v3496_v19 }
 0x32a   : > { %2982 = vmatmul.mubr.msk.bf16.vlgmr.msra.gmra.mrb[32].mxu0 %vm1558_vm4, %v1693_v59 }
 0x32b   : > { %2994 = vmatpush3.bf16.msra.mxu0 %v3444_v0  ;;  %v1697_v8 = vpack.c.bf16 %v1688_v1, %v1688_v1 }
 0x32c   : > { %v3160_v53 = vpop.eup %3159  ;;  %2995 = vmatprep.subr.bf16.mxu0 %v3440_v60  ;;  %3004 = vmatpush3.bf16.msra.mxu1 %v3442_v61 }
 0x32d   : > { %v3162_v62 = vpop.eup %3161  ;;  %v1686_v63 = vmul.f32 %v3160_v53, %v3504_v23  ;;  %3074 = vmatprep.subr.msk.bf16.mxu1 %vm619_vm0, %v1940_v11 }
 0x32e   : > { %v3164_v2 = vpop.eup %3163  ;;  %v1689_v6 = vmul.f32 %v3162_v62, %v3500_v21 }
 0x32f   : > { %2996 = vmatpush3.bf16.msra.mxu0 %v3440_v60  ;;  %v1687_v3 = vmul.f32 %v3164_v2, %v3508_v24 }
 0x330   : > { %v3166_v4 = vpop.eup %3165  ;;  %3073 = vmatprep.subr.msk.bf16.mxu0 %vm619_vm0, %v1939_v10 }
 0x331   : > { %v1696_v5 = vpack.c.bf16 %v1687_v3, %v1686_v63  ;;  %v1690_v0 = vmul.f32 %v3166_v4, %v3512_v26 }
 0x332   : > { %v3168_v7 = vpop.eup %3167 }
 0x333   : > { %v1691_v61 = vmul.f32 %v3168_v7, %v3516_v28  ;;  %2997 = vmatprep.mubr.msk.bf16.mxu0 %vm1558_vm4, %v1696_v5  ;;  %v1698_v9 = vpack.c.bf16 %v1690_v0, %v1689_v6 }
 0x334   : > { %2998 = vmatmul.mubr.msk.bf16.vlgmr.msra.gmra.mrb[36].mxu0 %vm1558_vm4, %v1697_v8 }
 0x335   : > { %3005 = vmatprep.mubr.msk.bf16.mxu1 %vm1558_vm4, %v1698_v9  ;;  %v1699_v60 = vpack.c.bf16 %v1691_v61, %v1691_v61  ;;  %3010 = vmatpush3.bf16.msra.mxu0 %v1950_v12 }
 0x336   : > { %3075 = vmatprep.subr.msk.bf16.mxu0 %vm619_vm0, %v1941_v14 }
 0x337   : > { %3006 = vmatmul.mubr.msk.bf16.vlgmr.msra.gmra.mrb[36].mxu1 %vm1558_vm4, %v1699_v60  ;;  %v2756_v60 = vld [vmem:[%s3676_s6] ss:$0 sm:$0xff] }
 0x338   : > { %3016 = vmatpush3.bf16.msra.mxu1 %v2007_v13 }
 0x339   : > { %3076 = vmatprep.subr.msk.bf16.mxu1 %vm619_vm0, %v1942_v15  ;;  %v585_v15 = vld [vmem:[%s556_s28] sm:$0xff] }
 0x3fa   : > { %v2991_v16 = vpop.f32.mrb[32].mxu1 }
 0x3fb   : > { %v1803_v18 = vpop.f32.mrb[33].mxu1  ;;  %v1934_v17 = vpack.c.bf16 %v2991_v16, %v2991_v16 }
 0x3fc   : > { %v2992_v19 = vpop.f32.mrb[34].mxu1 }
 0x3fd   : > { %v2983_v20 = vpop.f32.mrb[32].mxu0  ;;  %v1806_v21 = vpop.f32.mrb[35].mxu1 }
 0x3fe   : > { %v1933_v22 = vpack.c.bf16 %v1806_v21, %v1803_v18  ;;  %v1746_v23 = vpop.f32.mrb[33].mxu0  ;;  %v1932_v28 = vpack.c.bf16 %v2983_v20, %v2983_v20  ;;  %v586_v20 = vld [vmem:[%s556_s28 + $0x8] sm:$0xff]  ;;  %v587_v21 = vld [vmem:[%s556_s28 + $0x10] sm:$0x1] }
 0x3ff   : > { %v2984_v24 = vpop.f32.mrb[34].mxu0 }
 0x400   : > { %v1749_v26 = vpop.f32.mrb[35].mxu0  ;;  %3017 = vmatprep.mubr.msk.bf16.mxu1 %vm612_vm1, %v1933_v22 }
 0x401   : > { %v1931_v27 = vpack.c.bf16 %v1749_v26, %v1746_v23  ;;  %3018 = vmatmul.mubr.msk.bf16.vlgmr.msra.gmra.mrb[40].mxu1 %vm612_vm1, %v1934_v17 }
 0x402   : > { %3028 = vmatpush3.bf16.msra.mxu1 %v2121_v25 }
 0x403   : > { %3011 = vmatprep.mubr.msk.bf16.mxu0 %vm612_vm1, %v1931_v27 }
 0x404   : > { %3012 = vmatmul.mubr.msk.bf16.vlgmr.msra.gmra.mrb[40].mxu0 %vm612_vm1, %v1932_v28 }
 0x405   : > { %3022 = vmatpush3.bf16.msra.mxu0 %v2064_v29 }
 0x407   : > { %v2999_v30 = vpop.f32.mrb[36].mxu0 }
 0x408   : > { %v1860_v31 = vpop.f32.mrb[37].mxu0  ;;  %v1936_v38 = vpack.c.bf16 %v2999_v30, %v2999_v30 }
 0x409   : > { %v3000_v34 = vpop.f32.mrb[38].mxu0 }
 0x40a   : > { %v1863_v35 = vpop.f32.mrb[39].mxu0  ;;  %v3007_v36 = vpop.f32.mrb[36].mxu1 }
 0x40b   : > { %v1935_v37 = vpack.c.bf16 %v1863_v35, %v1860_v31  ;;  %v1917_v32 = vpop.f32.mrb[37].mxu1  ;;  %v1938_v41 = vpack.c.bf16 %v3007_v36, %v3007_v36 }
 0x40c   : > { %v3008_v33 = vpop.f32.mrb[38].mxu1 }
 0x40d   : > { %v1920_v39 = vpop.f32.mrb[39].mxu1  ;;  %3023 = vmatprep.mubr.msk.bf16.mxu0 %vm612_vm1, %v1935_v37 }
 0x40e   : > { %v1937_v40 = vpack.c.bf16 %v1920_v39, %v1917_v32  ;;  %3024 = vmatmul.mubr.msk.bf16.vlgmr.msra.gmra.mrb[44].mxu0 %vm612_vm1, %v1936_v38 }
 0x410   : > { %3029 = vmatprep.mubr.msk.bf16.mxu1 %vm612_vm1, %v1937_v40 }
 0x411   : > { %3030 = vmatmul.mubr.msk.bf16.vlgmr.msra.gmra.mrb[44].mxu1 %vm612_vm1, %v1938_v41 }
 0x4d4   : > { %v3019_v42 = vpop.f32.mrb[40].mxu1 }
 0x4d5   : > { %v2043_v43 = vpop.f32.mrb[41].mxu1  ;;  %v2188_v49 = vsel %vm2186_vm5, %v3019_v42, 0.0 }
 0x4d6   : > { %v3020_v44 = vpop.f32.mrb[42].mxu1  ;;  %v2173_v46 = vsel %vm2171_vm6, %v2043_v43, 0.0  ;;  %v3113_v43 = vld [vmem:[%s3679_s9] sm:$0xff]  }
 0x4d7   : > { %v3013_v45 = vpop.f32.mrb[40].mxu0  ;;  %v2046_v48 = vpop.f32.mrb[43].mxu1  ;;  %v3114_v44 = vld [vmem:[%s3679_s9 + $0x8] sm:$0xff]   ;;  %3033 = vmatprep.subr.bf16.mxu0 %v3113_v43 }
 0x4d8   : > { %v2187_v51 = vsel %vm2186_vm5, %v3013_v45, 0.0  ;;  %v1986_v52 = vpop.f32.mrb[41].mxu0  ;;  %v2180_v58 = vsel %vm2171_vm6, %v2046_v48, 0.0  ;;  %3034 = vmatpush3.bf16.msra.mxu0 %v3113_v43  ;;  %v3117_v45 = vld [vmem:[%s3681_s11] sm:$0xff]   ;;  %v3118_v48 = vld [vmem:[%s3681_s11 + $0x8] sm:$0xff]  }
 0x4d9   : > { %v2189_v47 = vadd.f32 %v2188_v49, %v2187_v51  ;;  %v2172_v55 = vsel %vm2171_vm6, %v1986_v52, 0.0  ;;  %v3014_v56 = vpop.f32.mrb[42].mxu0  ;;  %3035 = vmatprep.subr.bf16.mxu0 %v3114_v44  ;;  %3041 = vmatprep.subr.bf16.mxu1 %v3117_v45 }
 0x4da   : > { %v2174_v57 = vadd.f32 %v2173_v46, %v2172_v55  ;;  %v1989_v54 = vpop.f32.mrb[43].mxu0  ;;  %3042 = vmatpush3.bf16.msra.mxu1 %v3117_v45 }
 0x4db   : > { %v2179_v59 = vsel %vm2171_vm6, %v1989_v54, 0.0  ;;  %3043 = vmatprep.subr.bf16.mxu1 %v3118_v48 }
 0x4dc   : > { %v2181_v50 = vadd.f32 %v2180_v58, %v2179_v59  ;;  %3036 = vmatpush3.bf16.msra.mxu0 %v3114_v44  ;;  %v2757_v59 = vld [vmem:[%s3677_s7] ss:$0 sm:$0xff] }
 0x4de   : > { %3044 = vmatpush3.bf16.msra.mxu1 %v3118_v48 }
 0x4e1   : > { %v3025_v53 = vpop.f32.mrb[44].mxu0 }
 0x4e2   : > { %v2190_v62 = vsel %vm2186_vm5, %v3025_v53, 0.0  ;;  %v2100_v63 = vpop.f32.mrb[45].mxu0 }
 0x4e3   : > { %v2191_v2 = vadd.f32 %v2190_v62, %v2189_v47  ;;  %v2175_v1 = vsel %vm2171_vm6, %v2100_v63, 0.0  ;;  %v3026_v3 = vpop.f32.mrb[46].mxu0  ;;  %v2758_v62 = vld [vmem:[%s3678_s8] ss:$0 sm:$0xff] }
 0x4e4   : > { %v2176_v4 = vadd.f32 %v2175_v1, %v2174_v57  ;;  %v2103_v5 = vpop.f32.mrb[47].mxu0  ;;  %v3031_v6 = vpop.f32.mrb[44].mxu1 }
 0x4e5   : > { %v2182_v0 = vsel %vm2171_vm6, %v2103_v5, 0.0  ;;  %v2192_v7 = vsel %vm2186_vm5, %v3031_v6, 0.0  ;;  %v2157_v8 = vpop.f32.mrb[45].mxu1 }
 0x4e6   : > { %v2183_v61 = vadd.f32 %v2182_v0, %v2181_v50  ;;  %v2193_v9 = vadd.f32 %v2192_v7, %v2191_v2  ;;  %v2177_v10 = vsel %vm2171_vm6, %v2157_v8, 0.0  ;;  %v3032_v11 = vpop.f32.mrb[46].mxu1 }
 0x4e7   : > { %v2178_v12 = vadd.f32 %v2177_v10, %v2176_v4  ;;  %v2160_v13 = vpop.f32.mrb[47].mxu1 }
 0x4e8   : > { %v2184_v14 = vsel %vm2171_vm6, %v2160_v13, 0.0  ;;  %v2203_v16 = vadd.f32 %v2756_v60, %v2193_v9  ;;  %v2289_v9 = vld [vmem:[#allocation3 + $0x8] sm:$0x1]  ;;  %v3119_v13 = vld [vmem:[%s3681_s11 + $0x10] sm:$0xff]  }
 0x4e9   : > { %v2201_v18 = vadd.f32 %v2756_v60, %v2178_v12  ;;  %v2185_v19 = vadd.f32 %v2184_v14, %v2183_v61  ;;  %3045 = vmatprep.subr.bf16.mxu1 %v3119_v13  ;;  %v3120_v14 = vld [vmem:[%s3681_s11 + $0x18] sm:$0xff]  }
 0x4ea   : > { %v2206_v25 = vadd.f32 %v2203_v16, %v587_v21  ;;  %3046 = vmatpush3.bf16.msra.mxu1 %v3119_v13  ;;  %v2762_v16 = vld [vmem:[%s3680_s10] ss:$0 sm:$0xff] }
 0x4eb   : > { %v2202_v22 = vadd.f32 %v2756_v60, %v2185_v19  ;;  %v2204_v23 = vadd.f32 %v2201_v18, %v585_v15  ;;  %3047 = vmatprep.subr.bf16.mxu1 %v3120_v14  ;;  %v3206_v15 = vmov 0.0  }
 0x4ec   : > { %v2215_v27 = vsel %vm2186_vm5, %v2206_v25, 0.0  ;;  %2294 = vst.msk [vmem:[#allocation4 + $0x10] sm:$0x1] %vm2186_vm5, %v3206_v15 }
 0x4ed   : > { %v2209_v17 = vsel %vm2171_vm6, %v2204_v23, 0.0  ;;  %v2205_v24 = vadd.f32 %v2202_v22, %v586_v20  ;;  %2292 = vst.msk [vmem:[#allocation4] sm:$0xff] %vm2171_vm6, %v3206_v15  ;;  %2293 = vst.msk [vmem:[#allocation4 + $0x8] sm:$0xff] %vm2171_vm6, %v3206_v15 }
 0x4ee   : > { %2210 = vadd.xlane.f32.xlu0 %v2209_v17  ;;  %3048 = vmatpush3.bf16.msra.mxu1 %v3120_v14 }
 0x4ef   : > { %v2212_v26 = vsel %vm2171_vm6, %v2205_v24, 0.0 }
 0x4f0   : > { %2213 = vadd.xlane.f32.xlu1 %v2212_v26 }
 0x4f2   : > { %2216 = vadd.xlane.f32.xlu0 %v2215_v27 }
 0x57b   : > { %v2211_v28 = vpop.xlane.xlu0 %2210 }
 0x57c   : > { %v2219_v29 = vmul.f32 0.03125, %v2211_v28 }
 0x57d   : > { %v2214_v30 = vpop.xlane.xlu1 %2213 }
 0x57e   : > { %v2222_v31 = vsub.f32 %v2204_v23, %v2219_v29  ;;  %v2220_v34 = vmul.f32 0.03125, %v2214_v30  ;;  %v2389_v29 = vld [vmem:[#allocation4 + $0x10] sm:$0x1]  ;;  %v2387_v30 = vld [vmem:[#allocation4] sm:$0xff] }
 0x57f   : > { %v2217_v35 = vpop.xlane.xlu0 %2216 }
 0x580   : > { %v2223_v36 = vsub.f32 %v2205_v24, %v2220_v34  ;;  %v2221_v37 = vmul.f32 0.03125, %v2217_v35  ;;  %v2225_v32 = vmul.f32 %v2222_v31, %v2222_v31 }
 0x582   : > { %v2224_v38 = vsub.f32 %v2206_v25, %v2221_v37  ;;  %v2228_v33 = vsel %vm2171_vm6, %v2225_v32, 0.0  ;;  %v2226_v39 = vmul.f32 %v2223_v36, %v2223_v36 }
 0x583   : > { %2229 = vadd.xlane.f32.xlu1 %v2228_v33 }
 0x584   : > { %v2231_v40 = vsel %vm2171_vm6, %v2226_v39, 0.0  ;;  %v2227_v41 = vmul.f32 %v2224_v38, %v2224_v38 }
 0x585   : > { %2232 = vadd.xlane.f32.xlu0 %v2231_v40 }
 0x586   : > { %v2234_v42 = vsel %vm2186_vm5, %v2227_v41, 0.0 }
 0x587   : > { %2235 = vadd.xlane.f32.xlu1 %v2234_v42  ;;  %v2775_v42 = vld [vmem:[%s3682_s12] ss:$0 sm:$0xff] }
 0x610   : > { %v2230_v49 = vpop.xlane.xlu1 %2229 }
 0x611   : > { %v2237_v51 = vmul.f32 0.03125, %v2230_v49 }
 0x612   : > { %v2233_v52 = vpop.xlane.xlu0 %2232 }
 0x613   : > { %v2240_v46 = vadd.f32 1e-05, %v2237_v51  ;;  %v2238_v47 = vmul.f32 0.03125, %v2233_v52 }
 0x614   : > { %v2236_v55 = vpop.xlane.xlu1 %2235 }
 0x615   : > { %3169 = vrsqrt.f32 %v2240_v46  ;;  %v2241_v56 = vadd.f32 1e-05, %v2238_v47  ;;  %v2239_v57 = vmul.f32 0.03125, %v2236_v55 }
 0x617   : > { %3171 = vrsqrt.f32 %v2241_v56  ;;  %v2242_v54 = vadd.f32 1e-05, %v2239_v57 }
 0x619   : > { %3173 = vrsqrt.f32 %v2242_v54 }
 0x61f   : > { %v3170_v58 = vpop.eup %3169 }
 0x620   : > { %v2246_v50 = vmul.f32 %v3170_v58, %v2222_v31 }
 0x621   : > { %v3172_v53 = vpop.eup %3171 }
 0x622   : > { %v2255_v63 = vmul.f32 %v2757_v59, %v2246_v50  ;;  %v2247_v2 = vmul.f32 %v3172_v53, %v2223_v36  ;;  %v2388_v36 = vld [vmem:[#allocation4 + $0x8] sm:$0xff] }
 0x623   : > { %v3174_v1 = vpop.eup %3173 }
 0x624   : > { %v2264_v3 = vadd.f32 %v2758_v62, %v2255_v63  ;;  %v2256_v4 = vmul.f32 %v2757_v59, %v2247_v2  ;;  %v2248_v5 = vmul.f32 %v3174_v1, %v2224_v38 }
 0x626   : > { %2267 = vst.msk [vmem:[#allocation2] sm:$0xff] %vm2171_vm6, %v2264_v3  ;;  %v2780_v6 = vpack.c.bf16 %v2264_v3, %v2264_v3  ;;  %v2265_v0 = vadd.f32 %v2758_v62, %v2256_v4  ;;  %v2257_v7 = vmul.f32 %v2757_v59, %v2248_v5 }
 0x628   : > { %2284 = vst.msk [vmem:[#allocation3] sm:$0xf] %vm2283_vm7, %v2780_v6  ;;  %v2781_v8 = vpack.c.bf16 %v2265_v0, %v2265_v0  ;;  %v2266_v61 = vadd.f32 %v2758_v62, %v2257_v7 }
 0x629   : > { %2268 = vst.msk [vmem:[#allocation2 + $0x8] sm:$0xff] %vm2171_vm6, %v2265_v0 }
 0x62a   : > { %2285 = vst.msk [vmem:[#allocation3 + $0x4] sm:$0xf] %vm2283_vm7, %v2781_v8  ;;  %v2782_v60 = vpack.c.bf16 %v2266_v61, %v2266_v61 }
 0x62b   : > { %2269 = vst.msk [vmem:[#allocation2 + $0x10] sm:$0x1] %vm2186_vm5, %v2266_v61 }
 0x62c   : > { %v2290_v10 = vsel %vm2288_vm9, %v2782_v60, %v2289_v9 }
 0x62d   : > { %2291 = vst [vmem:[#allocation3 + $0x8] sm:$0x1] %v2290_v10  ;;  %v2489_v39 = vld [vmem:[#allocation2] sm:$0xff] }
 0x630   : > { %v2490_v48 = vld [vmem:[#allocation2 + $0x8] sm:$0xff] }
 0x631   : > { %v3115_v11 = vld [vmem:[#allocation3] sm:$0xff]  }
 0x632   : > { %3037 = vmatprep.mubr.msk.bf16.mxu0 %vm2171_vm6, %v3115_v11  ;;  %v2491_v43 = vld [vmem:[#allocation2 + $0x10] sm:$0x1] }
 0x634   : > { %v3116_v12 = vld [vmem:[#allocation3 + $0x8] ss:$0 sps:$4 sm:$0x11]  }
 0x635   : > { %3038 = vmatmul.mubr.msk.bf16.vlgmr.msra.gmra.mrb[48].mxu0 %vm2171_vm6, %v3116_v12 }
 0x708   : > { %v3039_v18 = vpop.f32.mrb[48].mxu0 }
 0x709   : > { %v2379_v19 = vadd.f32 %v3039_v18, %v2762_v16  ;;  %v2370_v20 = vpop.f32.mrb[49].mxu0 }
 0x70a   : > { %v2371_v21 = vadd.f32 %v2762_v16, %v2370_v20  ;;  %v3040_v22 = vpop.f32.mrb[50].mxu0  ;;  %v2777_v20 = vld [vmem:[%s3684_s14] ss:$0 sm:$0xff] }
 0x70b   : > { %v2373_v23 = vpop.f32.mrb[51].mxu0  ;;  %v2386_v24 = vmax.f32 %v2379_v19, 0.0 }
 0x70c   : > { %v2374_v17 = vadd.f32 %v2762_v16, %v2373_v23  ;;  %v2384_v25 = vmax.f32 %v2371_v21, 0.0  ;;  %v2776_v16 = vld [vmem:[%s3683_s13] ss:$0 sm:$0xff] }
 0x70d   : > { %v2391_v28 = vpack.c.bf16 %v2386_v24, %v2386_v24 }
 0x70e   : > { %v2385_v26 = vmax.f32 %v2374_v17, 0.0 }
 0x710   : > { %v2390_v27 = vpack.c.bf16 %v2385_v26, %v2384_v25 }
 0x712   : > { %3049 = vmatprep.mubr.msk.bf16.mxu1 %vm2424_vm10, %v2390_v27 }
 0x713   : > { %3050 = vmatmul.mubr.msk.bf16.vlgmr.msra.gmra.mrb[48].mxu1 %vm2424_vm10, %v2391_v28 }
 0x7e6   : > { %v3051_v31 = vpop.f32.mrb[48].mxu1 }
 0x7e7   : > { %v2481_v34 = vadd.f32 %v3051_v31, %v2389_v29  ;;  %v2465_v35 = vpop.f32.mrb[49].mxu1 }
 0x7e8   : > { %v2479_v37 = vadd.f32 %v2465_v35, %v2387_v30  ;;  %v3052_v32 = vpop.f32.mrb[50].mxu1 }
 0x7e9   : > { %2485 = vst.msk [vmem:[#allocation4 + $0x10] sm:$0x1] %vm2186_vm5, %v2481_v34  ;;  %v2468_v38 = vpop.f32.mrb[51].mxu1 }
 0x7ea   : > { %2482 = vst.msk [vmem:[#allocation4] sm:$0xff] %vm2171_vm6, %v2479_v37  ;;  %v2480_v33 = vadd.f32 %v2468_v38, %v2388_v36 }
 0x7ec   : > { %2483 = vst.msk [vmem:[#allocation4 + $0x8] sm:$0xff] %vm2171_vm6, %v2480_v33 }
 0x7f0   : > { %v2494_v40 = vld [vmem:[#allocation4 + $0x10] sm:$0x1] }
 0x7f1   : > { %v2492_v41 = vld [vmem:[#allocation4] sm:$0xff]  ;;  %v2497_v45 = vadd.f32 %v2494_v40, %v2491_v43 }
 0x7f2   : > { %v2495_v44 = vadd.f32 %v2492_v41, %v2489_v39 }
 0x7f3   : > { %v2493_v49 = vld [vmem:[#allocation4 + $0x8] sm:$0xff]  ;;  %v2507_v55 = vadd.f32 %v2775_v42, %v2497_v45 }
 0x7f4   : > { %v2505_v51 = vadd.f32 %v2775_v42, %v2495_v44  ;;  %v2496_v52 = vadd.f32 %v2493_v49, %v2490_v48 }
 0x7f5   : > { %v2516_v57 = vsel %vm2186_vm5, %v2507_v55, 0.0 }
 0x7f6   : > { %v2510_v46 = vsel %vm2171_vm6, %v2505_v51, 0.0  ;;  %v2506_v47 = vadd.f32 %v2775_v42, %v2496_v52 }
 0x7f7   : > { %2511 = vadd.xlane.f32.xlu0 %v2510_v46 }
 0x7f8   : > { %v2513_v56 = vsel %vm2171_vm6, %v2506_v47, 0.0 }
 0x7f9   : > { %2514 = vadd.xlane.f32.xlu1 %v2513_v56 }
 0x7fb   : > { %2517 = vadd.xlane.f32.xlu0 %v2516_v57 }
 0x884   : > { %v2512_v54 = vpop.xlane.xlu0 %2511 }
 0x885   : > { %v2520_v58 = vmul.f32 0.03125, %v2512_v54 }
 0x886   : > { %v2515_v59 = vpop.xlane.xlu1 %2514 }
 0x887   : > { %v2523_v50 = vsub.f32 %v2505_v51, %v2520_v58  ;;  %v2521_v53 = vmul.f32 0.03125, %v2515_v59 }
 0x888   : > { %v2518_v62 = vpop.xlane.xlu0 %2517 }
 0x889   : > { %v2524_v63 = vsub.f32 %v2506_v47, %v2521_v53  ;;  %v2522_v2 = vmul.f32 0.03125, %v2518_v62  ;;  %v2526_v1 = vmul.f32 %v2523_v50, %v2523_v50 }
 0x88b   : > { %v2525_v3 = vsub.f32 %v2507_v55, %v2522_v2  ;;  %v2529_v4 = vsel %vm2171_vm6, %v2526_v1, 0.0  ;;  %v2527_v5 = vmul.f32 %v2524_v63, %v2524_v63 }
 0x88c   : > { %2530 = vadd.xlane.f32.xlu1 %v2529_v4 }
 0x88d   : > { %v2532_v6 = vsel %vm2171_vm6, %v2527_v5, 0.0  ;;  %v2528_v0 = vmul.f32 %v2525_v3, %v2525_v3 }
 0x88e   : > { %2533 = vadd.xlane.f32.xlu0 %v2532_v6 }
 0x88f   : > { %v2535_v7 = vsel %vm2186_vm5, %v2528_v0, 0.0 }
 0x890   : > { %2536 = vadd.xlane.f32.xlu1 %v2535_v7 }
 0x919   : > { %v2531_v8 = vpop.xlane.xlu1 %2530 }
 0x91a   : > { %v2538_v61 = vmul.f32 0.03125, %v2531_v8 }
 0x91b   : > { %v2534_v9 = vpop.xlane.xlu0 %2533 }
 0x91c   : > { %v2541_v60 = vadd.f32 1e-05, %v2538_v61  ;;  %v2539_v10 = vmul.f32 0.03125, %v2534_v9 }
 0x91d   : > { %v2537_v11 = vpop.xlane.xlu1 %2536 }
 0x91e   : > { %3175 = vrsqrt.f32 %v2541_v60  ;;  %v2542_v12 = vadd.f32 1e-05, %v2539_v10  ;;  %v2540_v13 = vmul.f32 0.03125, %v2537_v11 }
 0x920   : > { %3177 = vrsqrt.f32 %v2542_v12  ;;  %v2543_v14 = vadd.f32 1e-05, %v2540_v13 }
 0x922   : > { %3179 = vrsqrt.f32 %v2543_v14 }
 0x928   : > { %v3176_v15 = vpop.eup %3175 }
 0x929   : > { %v2547_v18 = vmul.f32 %v3176_v15, %v2523_v50 }
 0x92a   : > { %v3178_v19 = vpop.eup %3177 }
 0x92b   : > { %v2556_v21 = vmul.f32 %v2776_v16, %v2547_v18  ;;  %v2548_v22 = vmul.f32 %v3178_v19, %v2524_v63 }
 0x92c   : > { %v3180_v23 = vpop.eup %3179 }
 0x92d   : > { %v2565_v17 = vadd.f32 %v2777_v20, %v2556_v21  ;;  %v2557_v24 = vmul.f32 %v2776_v16, %v2548_v22  ;;  %v2549_v25 = vmul.f32 %v3180_v23, %v2525_v3 }
 0x92f   : > { %2568 = vst.msk [vmem:[%s579_s27] sm:$0xff] %vm2171_vm6, %v2565_v17  ;;  %v2566_v26 = vadd.f32 %v2777_v20, %v2557_v24  ;;  %v2558_v27 = vmul.f32 %v2776_v16, %v2549_v25 }
 0x931   : > { %2569 = vst.msk [vmem:[%s579_s27 + $0x8] sm:$0xff] %vm2171_vm6, %v2566_v26  ;;  %v2567_v28 = vadd.f32 %v2777_v20, %v2558_v27 }
 0x933   : > { %2570 = vst.msk [vmem:[%s579_s27 + $0x10] sm:$0x1] %vm2186_vm5, %v2567_v28 }
 0x934 PF: > { %s25_s20 = sadd.s32 1, %s3203_s20   ;;  %s3686_s18 = smov %s3199_s19 }
 0x935   : > { %p22_p5 = scmp.ge.s32.totalorder %s25_s20, 4   ;;  %s3687_s19 = smov %s3689_s21 }
 0x937   :  { %24 = sbr.rel (!%p22_p5) target bundleno = 2 (0x2), region = 130 }

</bundles_post_ra>
